<compile_context>
chip_gen: v5e
topology: v5e:2x2
jax: 0.10.0
libtpu: 0.0.40
codegen_flags: <defaults>
</compile_context>

<pallas_src>
import jax
import jax.numpy as jnp
from jax.experimental import pallas as pl
from jax.experimental.pallas import tpu as pltpu

_EPS = 1e-5
_LANE = 128


def _round_up(x, m):
    return (x + m - 1) // m * m


def _compiler_params(est_bytes):
    # Never clamp below the actual (double-buffered) requirement; 32 MiB floor,
    # capped well below v5e/v6e physical VMEM (per-image tiles stay far smaller
    # than v7x's 64 MiB for BasicBlock shapes).
    limit = int(min(max(2 * est_bytes, 32 << 20), 96 << 20))
    return pltpu.CompilerParams(dimension_semantics=("parallel",),
                                vmem_limit_bytes=limit)


# --------------------------- kernels ---------------------------------------

def _make_conv_kernel(H, W, c_in, c_out, fuse_bn_relu):
    """3x3 stride-1 SAME conv on one image, optionally applying a folded
    BN scale/bias + ReLU to the input first (used to fuse bn1+relu into conv2).

    Emits: y (H, W, c_out) bf16 and per-image stats (2, c_out) f32
    (row 0 = sum(y), row 1 = sum(y*y)), computed from the f32 accumulator.
    """
    taps = [(dy, dx) for dy in range(3) for dx in range(3)]

    def kernel(*refs):
        if fuse_bn_relu:
            a_ref, sc_ref, bi_ref, w_ref, y_ref, st_ref, pad_sc = refs
        else:
            a_ref, w_ref, y_ref, st_ref, pad_sc = refs

        a = a_ref[...].astype(jnp.float32)
        if fuse_bn_relu:
            a = jnp.maximum(a * sc_ref[...] + bi_ref[...], 0.0)

        # In-kernel spatial zero-pad (VMEM only; no HBM halo / im2col slab).
        pad_sc[...] = jnp.zeros_like(pad_sc)
        pad_sc[1:H + 1, 1:W + 1, :] = a

        acc = jnp.zeros((H * W, c_out), jnp.float32)
        for t, (dy, dx) in enumerate(taps):
            tap = pad_sc[dy:dy + H, dx:dx + W, :]
            tap = tap.reshape(H * W, c_in).astype(jnp.bfloat16)
            acc = acc + jnp.dot(tap, w_ref[t],
                                preferred_element_type=jnp.float32)

        y_ref[...] = acc.reshape(H, W, c_out).astype(y_ref.dtype)
        st_ref[...] = jnp.concatenate(
            [jnp.sum(acc, axis=0, keepdims=True),
             jnp.sum(acc * acc, axis=0, keepdims=True)], axis=0)

    return kernel


# --------------------------- pallas_call wrappers ---------------------------

def _conv_pass(a, w, scale=None, bias=None):
    """Per-image conv3x3 (optionally preceded by folded BN+ReLU on the input).

    a: (N, H, W, c_in); w: (9, c_in, c_out) bf16 (c_out is 128-padded).
    Returns y (N, H, W, c_out) bf16 and per-image stats (N, 2, c_out) f32.
    """
    N, H, W, c_in = a.shape
    c_out = w.shape[-1]
    assert w.shape == (9, c_in, c_out)
    fuse = scale is not None

    kernel = _make_conv_kernel(H, W, c_in, c_out, fuse)

    a_spec = pl.BlockSpec((None, H, W, c_in), lambda i: (i, 0, 0, 0))
    w_spec = pl.BlockSpec((9, c_in, c_out), lambda i: (0, 0, 0))
    vec_spec = pl.BlockSpec((1, c_out), lambda i: (0, 0))
    y_spec = pl.BlockSpec((None, H, W, c_out), lambda i: (i, 0, 0, 0))
    st_spec = pl.BlockSpec((None, 2, c_out), lambda i: (i, 0, 0))

    if fuse:
        inputs = (a, scale, bias, w)
        in_specs = [a_spec, vec_spec, vec_spec, w_spec]
    else:
        inputs = (a, w)
        in_specs = [a_spec, w_spec]

    img = H * W
    est = (2 * (img * c_in * a.dtype.itemsize          # activation block
                + 9 * c_in * c_out * 2                 # weights (bf16)
                + img * c_out * 2                      # y output (bf16)
                + 2 * c_out * 4                        # stats output
                + (2 * c_out * 4 if fuse else 0))      # scale / bias
           + (H + 2) * (W + 2) * c_in * 4              # pad scratch
           + 5 * img * c_out * 4)                      # f32 acc + temporaries

    return pl.pallas_call(
        kernel,
        out_shape=(jax.ShapeDtypeStruct((N, H, W, c_out), jnp.bfloat16),
                   jax.ShapeDtypeStruct((N, 2, c_out), jnp.float32)),
        grid=(N,),
        in_specs=in_specs,
        out_specs=(y_spec, st_spec),
        scratch_shapes=[pltpu.VMEM((H + 2, W + 2, c_in), jnp.float32)],
        compiler_params=_compiler_params(est),
    )(*inputs)


def _bn_add_relu(y, scale, bias, identity):
    """out = relu(bn2(y) + identity), per image.  Output is unpadded NHWC."""
    N, H, W, C = identity.shape
    cpad = y.shape[-1]

    def kernel(y_ref, sc_ref, bi_ref, x_ref, o_ref):
        bn = y_ref[...].astype(jnp.float32) * sc_ref[...] + bi_ref[...]
        o_ref[...] = jnp.maximum(bn[:, :, :C] + x_ref[...], 0.0)

    img = H * W
    est = (2 * (img * cpad * 2 + 2 * cpad * 4 + 2 * img * C * 4)
           + 2 * img * cpad * 4)

    return pl.pallas_call(
        kernel,
        out_shape=jax.ShapeDtypeStruct((N, H, W, C), jnp.float32),
        grid=(N,),
        in_specs=[pl.BlockSpec((None, H, W, cpad), lambda i: (i, 0, 0, 0)),
                  pl.BlockSpec((1, cpad), lambda i: (0, 0)),
                  pl.BlockSpec((1, cpad), lambda i: (0, 0)),
                  pl.BlockSpec((None, H, W, C), lambda i: (i, 0, 0, 0))],
        out_specs=pl.BlockSpec((None, H, W, C), lambda i: (i, 0, 0, 0)),
        compiler_params=_compiler_params(est),
    )(y, scale, bias, identity)


# --------------------------- BasicBlock forward -----------------------------

def basic_block_forward(x_nchw, params):
    """BasicBlock forward. x_nchw: (N, C, H, W) float32. Returns NCHW."""
    w1, g1, b1, w2, g2, b2 = params
    x = jnp.transpose(x_nchw, (0, 2, 3, 1)).astype(jnp.float32)  # NHWC
    N, H, W, C = x.shape
    Cout = w1.shape[-1]
    assert Cout == C, "identity path requires in_planes == planes (no downsample)"

    cpad = _round_up(Cout, _LANE)   # lane-dense output channels for the MXU
    rows = N * H * W

    # Weights: HWIO (3,3,Cin,Cout) -> (9, Cin, cpad) bf16; conv2's K dim is the
    # cpad-wide conv1 activation slab, so its K rows beyond Cout are zero.
    w1p = jnp.pad(w1.astype(jnp.float32).reshape(9, C, Cout),
                  ((0, 0), (0, 0), (0, cpad - Cout))).astype(jnp.bfloat16)
    w2p = jnp.pad(w2.astype(jnp.float32).reshape(9, Cout, Cout),
                  ((0, 0), (0, cpad - Cout), (0, cpad - Cout))).astype(jnp.bfloat16)

    def fold_bn(stats, g, b):
        # Reduce per-image partials (tiny) and fold training-mode BN into a
        # per-channel scale/bias.  Padded channels fold to scale=bias=0.
        s = jnp.sum(stats, axis=0)                        # (2, cpad) f32
        mean = s[0] / rows
        var = jnp.maximum(s[1] / rows - mean * mean, 0.0)  # precision note above
        gp = jnp.pad(g.astype(jnp.float32), (0, cpad - Cout))
        bp = jnp.pad(b.astype(jnp.float32), (0, cpad - Cout))
        scale = gp * jax.lax.rsqrt(var + _EPS)
        bias = bp - mean * scale
        return scale.reshape(1, cpad), bias.reshape(1, cpad)

    # conv1 (+ per-image BN stats)
    y1, st1 = _conv_pass(x, w1p)
    sc1, bi1 = fold_bn(st1, g1, b1)

    # bn1 + relu fused into the conv2 input path; conv2 (+ stats)
    y2, st2 = _conv_pass(y1, w2p, sc1, bi1)
    sc2, bi2 = fold_bn(st2, g2, b2)

    # bn2 + identity + relu, unpadded NHWC out
    out = _bn_add_relu(y2, sc2, bi2, x)
    return jnp.transpose(out, (0, 3, 1, 2))               # back to NCHW


# --------------------------- reference & test --------------------------------

def _reference(x_nchw, params):
    """Pure-JAX f32 reference (NHWC conv + training-mode BN)."""
    w1, g1, b1, w2, g2, b2 = params
    x = jnp.transpose(x_nchw, (0, 2, 3, 1)).astype(jnp.float32)

    def conv(a, w):
        return jax.lax.conv_general_dilated(
            a, w, window_strides=(1, 1), padding="SAME",
            dimension_numbers=("NHWC", "HWIO", "NHWC"))

    def bn(a, g, b):
        mean = jnp.mean(a, axis=(0, 1, 2), keepdims=True)
        var = jnp.mean((a - mean) ** 2, axis=(0, 1, 2), keepdims=True)
        return (a - mean) * jax.lax.rsqrt(var + _EPS) * g + b

    out = jax.nn.relu(bn(conv(x, w1), g1, b1))
    out = bn(conv(out, w2), g2, b2) + x
    out = jax.nn.relu(out)
    return jnp.transpose(out, (0, 3, 1, 2))


if __name__ == "__main__":
    # Small shapes: batch=2, in_planes=planes=8, spatial=16, stride=1.
    N, C, H, W = 2, 8, 16, 16

    key = jax.random.PRNGKey(0)
    kx, kw1, kw2 = jax.random.split(key, 3)

    x = jax.random.normal(kx, (N, C, H, W), dtype=jnp.float32)
    # Conv weights stored as HWIO = (3, 3, Cin, Cout); BN gamma=1, beta=0
    # (PyTorch default BN affine init), deterministic normal conv weights.
    w1 = 0.1 * jax.random.normal(kw1, (3, 3, C, C), dtype=jnp.float32)
    w2 = 0.1 * jax.random.normal(kw2, (3, 3, C, C), dtype=jnp.float32)
    g1 = jnp.ones((C,), jnp.float32)
    b1 = jnp.zeros((C,), jnp.float32)
    g2 = jnp.ones((C,), jnp.float32)
    b2 = jnp.zeros((C,), jnp.float32)
    params = (w1, g1, b1, w2, g2, b2)

    out = basic_block_forward(x, params)
    out = jax.block_until_ready(out)

    ref = jax.block_until_ready(_reference(x, params))
    assert out.shape == (N, C, H, W)
    # Tolerance loosened vs. the f32 version: matmul operands are bf16
    # (f32 accumulation), so expect ~1e-2-level relative error on conv outputs.
    assert jnp.allclose(out, ref, rtol=5e-2, atol=5e-2), (
        float(jnp.max(jnp.abs(out - ref))))

    print("KERNEL_OK")
</pallas_src>

<mosaic_0001>
module attributes {stable_mosaic.version = 11 : i64} {
  func.func @kernel(%arg0: i32, %arg1: memref<1x16x16x8xf32, #tpu.memory_space<vmem>>, %arg2: memref<9x8x128xbf16, #tpu.memory_space<vmem>>, %arg3: memref<1x16x16x128xbf16, #tpu.memory_space<vmem>>, %arg4: memref<1x2x128xf32, #tpu.memory_space<vmem>>, %arg5: memref<18x18x8xf32, #tpu.memory_space<vmem>>) attributes {dimension_semantics = [#tpu.dimension_semantics<parallel>], iteration_bounds = array<i64: 2>, scalar_prefetch = 0 : i64, scratch_operands = 1 : i64, tpu.core_type = #tpu.core_type<tc>, window_params = [{transform_indices = @transform_0, window_bounds = array<i64: 1, 16, 16, 8>}, {pipeline_mode = #tpu.pipeline_mode<synchronous>, transform_indices = @transform_1, window_bounds = array<i64: 9, 8, 128>}, {transform_indices = @transform_2, window_bounds = array<i64: 1, 16, 16, 128>}, {transform_indices = @transform_3, window_bounds = array<i64: 1, 2, 128>}]} {
    %c0 = arith.constant 0 : index
    %c0_0 = arith.constant 0 : index
    %c0_1 = arith.constant 0 : index
    %c0_2 = arith.constant 0 : index
    %0 = vector.load %arg1[%c0, %c0_0, %c0_1, %c0_2] : memref<1x16x16x8xf32, #tpu.memory_space<vmem>>, vector<1x16x16x8xf32>
    %1 = vector.shape_cast %0 : vector<1x16x16x8xf32> to vector<16x16x8xf32>
    %cst = arith.constant 0.000000e+00 : f32
    %2 = vector.broadcast %cst : f32 to vector<18x18x8xf32>
    %c0_3 = arith.constant 0 : index
    %c0_4 = arith.constant 0 : index
    %c0_5 = arith.constant 0 : index
    %3 = vector.load %arg5[%c0_3, %c0_4, %c0_5] : memref<18x18x8xf32, #tpu.memory_space<vmem>>, vector<18x18x8xf32>
    tpu.vector_store %arg5[%c0_3, %c0_4, %c0_5], %2 {strides = array<i32>} : memref<18x18x8xf32, #tpu.memory_space<vmem>>, vector<18x18x8xf32>,
    %c1 = arith.constant 1 : index
    %c1_6 = arith.constant 1 : index
    %c0_7 = arith.constant 0 : index
    %4 = vector.load %arg5[%c1, %c1_6, %c0_7] : memref<18x18x8xf32, #tpu.memory_space<vmem>>, vector<16x16x8xf32>
    tpu.vector_store %arg5[%c1, %c1_6, %c0_7], %1 {strides = array<i32>} : memref<18x18x8xf32, #tpu.memory_space<vmem>>, vector<16x16x8xf32>,
    %cst_8 = arith.constant 0.000000e+00 : f32
    %5 = vector.broadcast %cst_8 : f32 to vector<256x128xf32>
    %c0_9 = arith.constant 0 : index
    %c0_10 = arith.constant 0 : index
    %c0_11 = arith.constant 0 : index
    %6 = vector.load %arg5[%c0_9, %c0_10, %c0_11] : memref<18x18x8xf32, #tpu.memory_space<vmem>>, vector<16x16x8xf32>
    %7 = vector.shape_cast %6 : vector<16x16x8xf32> to vector<256x8xf32>
    %8 = arith.truncf %7 : vector<256x8xf32> to vector<256x8xbf16>
    %c0_12 = arith.constant 0 : index
    %c0_13 = arith.constant 0 : index
    %c0_14 = arith.constant 0 : index
    %9 = vector.load %arg2[%c0_12, %c0_13, %c0_14] : memref<9x8x128xbf16, #tpu.memory_space<vmem>>, vector<1x8x128xbf16>
    %10 = vector.shape_cast %9 : vector<1x8x128xbf16> to vector<8x128xbf16>
    %cst_15 = arith.constant dense<0.000000e+00> : vector<256x128xf32>
    %11 = tpu.matmul %8, %10, %cst_15 {dimension_numbers = #tpu.dot_dimension_numbers<[1], [0], [0], [1], [0, 0, 1, 1], [], []>} : vector<256x8xbf16>, vector<8x128xbf16>, vector<256x128xf32> -> vector<256x128xf32>
    %12 = arith.addf %5, %11 : vector<256x128xf32>
    %c0_16 = arith.constant 0 : index
    %c1_17 = arith.constant 1 : index
    %c0_18 = arith.constant 0 : index
    %13 = vector.load %arg5[%c0_16, %c1_17, %c0_18] : memref<18x18x8xf32, #tpu.memory_space<vmem>>, vector<16x16x8xf32>
    %14 = vector.shape_cast %13 : vector<16x16x8xf32> to vector<256x8xf32>
    %15 = arith.truncf %14 : vector<256x8xf32> to vector<256x8xbf16>
    %c1_19 = arith.constant 1 : index
    %c0_20 = arith.constant 0 : index
    %c0_21 = arith.constant 0 : index
    %16 = vector.load %arg2[%c1_19, %c0_20, %c0_21] : memref<9x8x128xbf16, #tpu.memory_space<vmem>>, vector<1x8x128xbf16>
    %17 = vector.shape_cast %16 : vector<1x8x128xbf16> to vector<8x128xbf16>
    %cst_22 = arith.constant dense<0.000000e+00> : vector<256x128xf32>
    %18 = tpu.matmul %15, %17, %cst_22 {dimension_numbers = #tpu.dot_dimension_numbers<[1], [0], [0], [1], [0, 0, 1, 1], [], []>} : vector<256x8xbf16>, vector<8x128xbf16>, vector<256x128xf32> -> vector<256x128xf32>
    %19 = arith.addf %12, %18 : vector<256x128xf32>
    %c0_23 = arith.constant 0 : index
    %c2 = arith.constant 2 : index
    %c0_24 = arith.constant 0 : index
    %20 = vector.load %arg5[%c0_23, %c2, %c0_24] : memref<18x18x8xf32, #tpu.memory_space<vmem>>, vector<16x16x8xf32>
    %21 = vector.shape_cast %20 : vector<16x16x8xf32> to vector<256x8xf32>
    %22 = arith.truncf %21 : vector<256x8xf32> to vector<256x8xbf16>
    %c2_25 = arith.constant 2 : index
    %c0_26 = arith.constant 0 : index
    %c0_27 = arith.constant 0 : index
    %23 = vector.load %arg2[%c2_25, %c0_26, %c0_27] : memref<9x8x128xbf16, #tpu.memory_space<vmem>>, vector<1x8x128xbf16>
    %24 = vector.shape_cast %23 : vector<1x8x128xbf16> to vector<8x128xbf16>
    %cst_28 = arith.constant dense<0.000000e+00> : vector<256x128xf32>
    %25 = tpu.matmul %22, %24, %cst_28 {dimension_numbers = #tpu.dot_dimension_numbers<[1], [0], [0], [1], [0, 0, 1, 1], [], []>} : vector<256x8xbf16>, vector<8x128xbf16>, vector<256x128xf32> -> vector<256x128xf32>
    %26 = arith.addf %19, %25 : vector<256x128xf32>
    %c1_29 = arith.constant 1 : index
    %c0_30 = arith.constant 0 : index
    %c0_31 = arith.constant 0 : index
    %27 = vector.load %arg5[%c1_29, %c0_30, %c0_31] : memref<18x18x8xf32, #tpu.memory_space<vmem>>, vector<16x16x8xf32>
    %28 = vector.shape_cast %27 : vector<16x16x8xf32> to vector<256x8xf32>
    %29 = arith.truncf %28 : vector<256x8xf32> to vector<256x8xbf16>
    %c3 = arith.constant 3 : index
    %c0_32 = arith.constant 0 : index
    %c0_33 = arith.constant 0 : index
    %30 = vector.load %arg2[%c3, %c0_32, %c0_33] : memref<9x8x128xbf16, #tpu.memory_space<vmem>>, vector<1x8x128xbf16>
    %31 = vector.shape_cast %30 : vector<1x8x128xbf16> to vector<8x128xbf16>
    %cst_34 = arith.constant dense<0.000000e+00> : vector<256x128xf32>
    %32 = tpu.matmul %29, %31, %cst_34 {dimension_numbers = #tpu.dot_dimension_numbers<[1], [0], [0], [1], [0, 0, 1, 1], [], []>} : vector<256x8xbf16>, vector<8x128xbf16>, vector<256x128xf32> -> vector<256x128xf32>
    %33 = arith.addf %26, %32 : vector<256x128xf32>
    %c1_35 = arith.constant 1 : index
    %c1_36 = arith.constant 1 : index
    %c0_37 = arith.constant 0 : index
    %34 = vector.load %arg5[%c1_35, %c1_36, %c0_37] : memref<18x18x8xf32, #tpu.memory_space<vmem>>, vector<16x16x8xf32>
    %35 = vector.shape_cast %34 : vector<16x16x8xf32> to vector<256x8xf32>
    %36 = arith.truncf %35 : vector<256x8xf32> to vector<256x8xbf16>
    %c4 = arith.constant 4 : index
    %c0_38 = arith.constant 0 : index
    %c0_39 = arith.constant 0 : index
    %37 = vector.load %arg2[%c4, %c0_38, %c0_39] : memref<9x8x128xbf16, #tpu.memory_space<vmem>>, vector<1x8x128xbf16>
    %38 = vector.shape_cast %37 : vector<1x8x128xbf16> to vector<8x128xbf16>
    %cst_40 = arith.constant dense<0.000000e+00> : vector<256x128xf32>
    %39 = tpu.matmul %36, %38, %cst_40 {dimension_numbers = #tpu.dot_dimension_numbers<[1], [0], [0], [1], [0, 0, 1, 1], [], []>} : vector<256x8xbf16>, vector<8x128xbf16>, vector<256x128xf32> -> vector<256x128xf32>
    %40 = arith.addf %33, %39 : vector<256x128xf32>
    %c1_41 = arith.constant 1 : index
    %c2_42 = arith.constant 2 : index
    %c0_43 = arith.constant 0 : index
    %41 = vector.load %arg5[%c1_41, %c2_42, %c0_43] : memref<18x18x8xf32, #tpu.memory_space<vmem>>, vector<16x16x8xf32>
    %42 = vector.shape_cast %41 : vector<16x16x8xf32> to vector<256x8xf32>
    %43 = arith.truncf %42 : vector<256x8xf32> to vector<256x8xbf16>
    %c5 = arith.constant 5 : index
    %c0_44 = arith.constant 0 : index
    %c0_45 = arith.constant 0 : index
    %44 = vector.load %arg2[%c5, %c0_44, %c0_45] : memref<9x8x128xbf16, #tpu.memory_space<vmem>>, vector<1x8x128xbf16>
    %45 = vector.shape_cast %44 : vector<1x8x128xbf16> to vector<8x128xbf16>
    %cst_46 = arith.constant dense<0.000000e+00> : vector<256x128xf32>
    %46 = tpu.matmul %43, %45, %cst_46 {dimension_numbers = #tpu.dot_dimension_numbers<[1], [0], [0], [1], [0, 0, 1, 1], [], []>} : vector<256x8xbf16>, vector<8x128xbf16>, vector<256x128xf32> -> vector<256x128xf32>
    %47 = arith.addf %40, %46 : vector<256x128xf32>
    %c2_47 = arith.constant 2 : index
    %c0_48 = arith.constant 0 : index
    %c0_49 = arith.constant 0 : index
    %48 = vector.load %arg5[%c2_47, %c0_48, %c0_49] : memref<18x18x8xf32, #tpu.memory_space<vmem>>, vector<16x16x8xf32>
    %49 = vector.shape_cast %48 : vector<16x16x8xf32> to vector<256x8xf32>
    %50 = arith.truncf %49 : vector<256x8xf32> to vector<256x8xbf16>
    %c6 = arith.constant 6 : index
    %c0_50 = arith.constant 0 : index
    %c0_51 = arith.constant 0 : index
    %51 = vector.load %arg2[%c6, %c0_50, %c0_51] : memref<9x8x128xbf16, #tpu.memory_space<vmem>>, vector<1x8x128xbf16>
    %52 = vector.shape_cast %51 : vector<1x8x128xbf16> to vector<8x128xbf16>
    %cst_52 = arith.constant dense<0.000000e+00> : vector<256x128xf32>
    %53 = tpu.matmul %50, %52, %cst_52 {dimension_numbers = #tpu.dot_dimension_numbers<[1], [0], [0], [1], [0, 0, 1, 1], [], []>} : vector<256x8xbf16>, vector<8x128xbf16>, vector<256x128xf32> -> vector<256x128xf32>
    %54 = arith.addf %47, %53 : vector<256x128xf32>
    %c2_53 = arith.constant 2 : index
    %c1_54 = arith.constant 1 : index
    %c0_55 = arith.constant 0 : index
    %55 = vector.load %arg5[%c2_53, %c1_54, %c0_55] : memref<18x18x8xf32, #tpu.memory_space<vmem>>, vector<16x16x8xf32>
    %56 = vector.shape_cast %55 : vector<16x16x8xf32> to vector<256x8xf32>
    %57 = arith.truncf %56 : vector<256x8xf32> to vector<256x8xbf16>
    %c7 = arith.constant 7 : index
    %c0_56 = arith.constant 0 : index
    %c0_57 = arith.constant 0 : index
    %58 = vector.load %arg2[%c7, %c0_56, %c0_57] : memref<9x8x128xbf16, #tpu.memory_space<vmem>>, vector<1x8x128xbf16>
    %59 = vector.shape_cast %58 : vector<1x8x128xbf16> to vector<8x128xbf16>
    %cst_58 = arith.constant dense<0.000000e+00> : vector<256x128xf32>
    %60 = tpu.matmul %57, %59, %cst_58 {dimension_numbers = #tpu.dot_dimension_numbers<[1], [0], [0], [1], [0, 0, 1, 1], [], []>} : vector<256x8xbf16>, vector<8x128xbf16>, vector<256x128xf32> -> vector<256x128xf32>
    %61 = arith.addf %54, %60 : vector<256x128xf32>
    %c2_59 = arith.constant 2 : index
    %c2_60 = arith.constant 2 : index
    %c0_61 = arith.constant 0 : index
    %62 = vector.load %arg5[%c2_59, %c2_60, %c0_61] : memref<18x18x8xf32, #tpu.memory_space<vmem>>, vector<16x16x8xf32>
    %63 = vector.shape_cast %62 : vector<16x16x8xf32> to vector<256x8xf32>
    %64 = arith.truncf %63 : vector<256x8xf32> to vector<256x8xbf16>
    %c8 = arith.constant 8 : index
    %c0_62 = arith.constant 0 : index
    %c0_63 = arith.constant 0 : index
    %65 = vector.load %arg2[%c8, %c0_62, %c0_63] : memref<9x8x128xbf16, #tpu.memory_space<vmem>>, vector<1x8x128xbf16>
    %66 = vector.shape_cast %65 : vector<1x8x128xbf16> to vector<8x128xbf16>
    %cst_64 = arith.constant dense<0.000000e+00> : vector<256x128xf32>
    %67 = tpu.matmul %64, %66, %cst_64 {dimension_numbers = #tpu.dot_dimension_numbers<[1], [0], [0], [1], [0, 0, 1, 1], [], []>} : vector<256x8xbf16>, vector<8x128xbf16>, vector<256x128xf32> -> vector<256x128xf32>
    %68 = arith.addf %61, %67 : vector<256x128xf32>
    %69 = vector.shape_cast %68 : vector<256x128xf32> to vector<16x16x128xf32>
    %70 = arith.truncf %69 : vector<16x16x128xf32> to vector<16x16x128xbf16>
    %c0_65 = arith.constant 0 : index
    %c0_66 = arith.constant 0 : index
    %c0_67 = arith.constant 0 : index
    %c0_68 = arith.constant 0 : index
    %71 = vector.load %arg3[%c0_65, %c0_66, %c0_67, %c0_68] : memref<1x16x16x128xbf16, #tpu.memory_space<vmem>>, vector<1x16x16x128xbf16>
    %72 = vector.shape_cast %71 : vector<1x16x16x128xbf16> to vector<16x16x128xbf16>
    %73 = vector.shape_cast %70 : vector<16x16x128xbf16> to vector<1x16x16x128xbf16>
    tpu.vector_store %arg3[%c0_65, %c0_66, %c0_67, %c0_68], %73 {strides = array<i32>} : memref<1x16x16x128xbf16, #tpu.memory_space<vmem>>, vector<1x16x16x128xbf16>,
    %cst_69 = arith.constant dense<0.000000e+00> : vector<128xf32>
    %74 = vector.multi_reduction <add>, %68, %cst_69 [0] : vector<256x128xf32> to vector<128xf32>
    %75 = vector.shape_cast %74 : vector<128xf32> to vector<1x128xf32>
    %76 = arith.mulf %68, %68 : vector<256x128xf32>
    %cst_70 = arith.constant dense<0.000000e+00> : vector<128xf32>
    %77 = vector.multi_reduction <add>, %76, %cst_70 [0] : vector<256x128xf32> to vector<128xf32>
    %78 = vector.shape_cast %77 : vector<128xf32> to vector<1x128xf32>
    %79 = tpu.concatenate %75, %78 in 0 : vector<1x128xf32>, vector<1x128xf32> -> vector<2x128xf32>
    %c0_71 = arith.constant 0 : index
    %c0_72 = arith.constant 0 : index
    %c0_73 = arith.constant 0 : index
    %80 = vector.load %arg4[%c0_71, %c0_72, %c0_73] : memref<1x2x128xf32, #tpu.memory_space<vmem>>, vector<1x2x128xf32>
    %81 = vector.shape_cast %80 : vector<1x2x128xf32> to vector<2x128xf32>
    %82 = vector.shape_cast %79 : vector<2x128xf32> to vector<1x2x128xf32>
    tpu.vector_store %arg4[%c0_71, %c0_72, %c0_73], %82 {strides = array<i32>} : memref<1x2x128xf32, #tpu.memory_space<vmem>>, vector<1x2x128xf32>,
    return
  }
  func.func @transform_0(%arg0: i32) -> (i32, i32, i32, i32) {
    %c0_i32 = arith.constant 0 : i32
    %c0_i32_0 = arith.constant 0 : i32
    %c0_i32_1 = arith.constant 0 : i32
    %c0_i32_2 = arith.constant 0 : i32
    return %arg0, %c0_i32, %c0_i32_0, %c0_i32_1 : i32, i32, i32, i32
  }
  func.func @transform_1(%arg0: i32) -> (i32, i32, i32) {
    %c0_i32 = arith.constant 0 : i32
    %c0_i32_0 = arith.constant 0 : i32
    %c0_i32_1 = arith.constant 0 : i32
    %c0_i32_2 = arith.constant 0 : i32
    return %c0_i32, %c0_i32_0, %c0_i32_1 : i32, i32, i32
  }
  func.func @transform_2(%arg0: i32) -> (i32, i32, i32, i32) {
    %c0_i32 = arith.constant 0 : i32
    %c0_i32_0 = arith.constant 0 : i32
    %c0_i32_1 = arith.constant 0 : i32
    %c0_i32_2 = arith.constant 0 : i32
    return %arg0, %c0_i32, %c0_i32_0, %c0_i32_1 : i32, i32, i32, i32
  }
  func.func @transform_3(%arg0: i32) -> (i32, i32, i32) {
    %c0_i32 = arith.constant 0 : i32
    %c0_i32_0 = arith.constant 0 : i32
    %c0_i32_1 = arith.constant 0 : i32
    return %arg0, %c0_i32, %c0_i32_0 : i32, i32, i32
  }
}

</mosaic_0001>

<bundles_post_ra>
// kernel: tpu_custom_call.1
= control target key start
LH: loop header
LB: loop body
LE: loop exit
PB: predicated region body
PF: predicated region fallthrough
CT: control target
= control target key end

     0   :  { %9 = vsyncpa [#allocation4], 0  ;;  %s3842_s0 = inlined_call_operand.vmem [shape: f32[2,16,16,8], index: 0, kind: input, shape index: {}]   ;;  %s3843_s1 = inlined_call_operand.vmem [shape: bf16[9,8,128], index: 1, kind: input, shape index: {}]   ;;  %s3844_s2 = inlined_call_operand.hbm [shape: bf16[2,16,16,128], index: 2, kind: output, shape index: {0}]   ;;  %s3845_s3 = inlined_call_operand.hbm [shape: f32[2,2,128], index: 3, kind: output, shape index: {1}]  }
   0x1   :  { %11 = vsyncpa [#allocation4 + $0x1], 0 }
   0x2   :  { %12 = vsyncpa [#allocation6], 0 }
   0x3   :  { %14 = vsyncpa [#allocation6 + $0x1], 0  ;;  %s2973_s12 = smov 0   ;;  %s2975_s13 = smov 0  }
   0x4   :  { %s2977_s14 = smov 0   ;;  %s2979_s15 = smov 0  }
   0x5 LB: > { %s2994_s16 = sadd.s32 4294967295, %s2948_s15   ;;  %s2540_s17 = sadd.s32 4294967294, %s2948_s15   ;;  %s2948_s15 = sphi %s2979_s15, %s3894_s15   ;;  %s2944_s14 = sphi %s2977_s14, %s3893_s14   ;;  %s2940_s13 = sphi %s2975_s13, %s3892_s13   ;;  %s2936_s12 = sphi %s2973_s12, %s3891_s12  }
   0x6   : > { %s2998_s18 = sadd.s32 1, %s2948_s15   ;;  %s74_s19 = sadd.s32 1, %s2944_s14 }
   0x7   : > { %s71_s20 = ssub.s32 %s2948_s15, %s2998_s18  ;;  %p84_p0 = scmp.ne.s32.totalorder %s2944_s14, %s2940_s13 }
   0x8   : > { %p72_p1 = scmp.eq.s32.totalorder %s71_s20, 0  ;;  %p85_p2 = scmp.eq.s32.totalorder %s2994_s16, 1 }
   0x9   : > { %p90_p3 = scmp.ne.s32.totalorder %s2940_s13, %s2936_s12  ;;  %p91_p4 = scmp.eq.s32.totalorder %s2540_s17, 1 }
   0xa   : > { %s3009_s21 = scalar_select %p72_p1, %s2944_s14, %s74_s19  }
   0xb   : > { %p3011_p5 = por %p85_p2, %p84_p0  ;;  %p3015_p6 = por %p91_p4, %p90_p3 }
   0xc   : > { %p2543_p7 = scmp.ge.s32.totalorder %s2948_s15, 1  ;;  %p146_p8 = scmp.lt.s32.totalorder %s2948_s15, 3 }
   0xe   : > { %p147_p9 = pnand %p2543_p7, %p146_p8 }
  0x10   : > { %150 = sbr.rel (%p147_p9) target bundleno = 817 (0x331), region = 28 }
  0x15   : > { %v2548_v0 = vld [vmem:[%s3843_s1 + $0x4] sm:$0xf]  ;;  %vm449_vm0 = vcmask 1043456   ;;  %p175_p10 = scmp.lt.s32.totalorder %s2994_s16, 1  ;;  %vm213_vm1 = vcmask 64512   ;;  %vm216_vm2 = vcmask 58368  }
  0x16   : > { %v451_v1 = vsel %vm449_vm0, %v2548_v0, 0  ;;  %v2950_v2 = vmov 0.0   ;;  %v2581_v10 = vld [vmem:[%s3843_s1 + $0x8] sm:$0xf]  ;;  %v2598_v12 = vld [vmem:[%s3843_s1 + $0xc] sm:$0xf] }
  0x17   : > { %227 = vst.msk [vmem:[#allocation2 + $0x60] sm:$0xff] %vm213_vm1, %v2950_v2  ;;  %2804 = vmatpush.bf16.msra.mxu1 %v451_v1  ;;  %2805 = vmatpush.bf16.msra.mxu2 %v451_v1  ;;  %s176_s26 = scalar_select %p175_p10, %s2994_s16, 1  ;;  %v781_v13 = vsel %vm449_vm0, %v2581_v10, 0  ;;  %v1003_v14 = vsel %vm449_vm0, %v2598_v12, 0  ;;  %v350_v15 = vld [vmem:[%s3843_s1] sm:$0xf] }
  0x18   : > { %228 = vst.msk [vmem:[#allocation2 + $0x68] sm:$0xff] %vm213_vm1, %v2950_v2  ;;  %2806 = vmatpush.bf16.msra.mxu3 %v451_v1  ;;  %460 = vmatpush.bf16.msra.mxu0 %v451_v1  ;;  %v591_v16 = vsel %vm449_vm0, %v350_v15, 0  ;;  %v2615_v17 = vld [vmem:[%s3843_s1 + $0x10] sm:$0xf]  ;;  %s3705_s29 = sand.u32 1, %s2940_s13   ;;  %s2708_s5 = sshll.u32 %s2994_s16, 7 }
  0x19   : > { %229 = vst.msk [vmem:[#allocation2 + $0x70] sm:$0x3] %vm216_vm2, %v2950_v2  ;;  %s2707_s27 = sshll.u32 %s176_s26, 8  ;;  %v1225_v18 = vsel %vm449_vm0, %v2615_v17, 0  ;;  %s2427_s8 = scalar_lea.hbm %s3844_s2, %s2708_s5 }
  0x1a   : > { %214 = vst.msk [vmem:[#allocation2] sm:$0xff] %vm213_vm1, %v2950_v2  ;;  %s3038_s30 = scalar_lea.vmem %s3842_s0, %s2707_s27  ;;  %s2430_s10 = sshll.u32 %s2427_s8, 4  ;;  %s2431_s10 = int_to_ptr.hbm [resolvable:$true] %s2430_s10 }
  0x1b   : > { %215 = vst.msk [vmem:[#allocation2 + $0x8] sm:$0xff] %vm213_vm1, %v2950_v2  ;;  %v187_v3 = vld [vmem:[%s3038_s30 + $0x30] sm:$0xff]  ;;  %v188_v4 = vld [vmem:[%s3038_s30 + $0x38] sm:$0xff]  ;;  %790 = vmatpush.bf16.msrb.mxu2 %v781_v13  ;;  %600 = vmatpush.bf16.msrb.mxu1 %v591_v16  ;;  %v189_v23 = vld [vmem:[%s3038_s30 + $0x40] sm:$0xff]  ;;  %s2411_s11 = scalar_lea.sflag [#allocation4], %s3705_s29  ;;  %s2868_s17 = sshra.s32 %s2431_s10, 4  ;;  %s2869_s17 = int_to_ptr.hbm [resolvable:$true] %s2868_s17 }
  0x1c   : > { %217 = vst.msk [vmem:[#allocation2 + $0x10] sm:$0x3] %vm216_vm2, %v2950_v2  ;;  %1012 = vmatpush.bf16.msrb.mxu3 %v1003_v14  ;;  %1234 = vmatpush.bf16.msrb.mxu0 %v1225_v18  ;;  %v195_v19 = vld [vmem:[%s3038_s30 + $0x70] sm:$0xff]  ;;  %v196_v20 = vld [vmem:[%s3038_s30 + $0x78] sm:$0xff]  ;;  %v190_v24 = vld [vmem:[%s3038_s30 + $0x48] sm:$0xff]  ;;  %s2870_s19 = scalar_lea.hbm %s2869_s17, 128  ;;  %p2875_p0 = scmp.lt.s32.totalorder %s2869_s17, %s3844_s2 }
  0x1d   : > { %276 = vst.msk [vmem:[#allocation2 + $0x61] sm:$0xff] %vm213_vm1, %v187_v3  ;;  %v203_v21 = vld [vmem:[%s3038_s30 + $0xb0] sm:$0xff]  ;;  %v204_v22 = vld [vmem:[%s3038_s30 + $0xb8] sm:$0xff]  ;;  %v197_v25 = vld [vmem:[%s3038_s30 + $0x80] sm:$0xff]  ;;  %p2871_p11 = scmp.ne.s32.totalorder %s2869_s17, %s2870_s19  ;;  %s2874_s25 = scalar_lea.hbm %s3844_s2, 256 }
  0x1e   : > { %277 = vst.msk [vmem:[#allocation2 + $0x69] sm:$0xff] %vm213_vm1, %v188_v4  ;;  %v198_v26 = vld [vmem:[%s3038_s30 + $0x88] sm:$0xff]  ;;  %v205_v27 = vld [vmem:[%s3038_s30 + $0xc0] sm:$0xff]  ;;  %v191_v35 = vld [vmem:[%s3038_s30 + $0x50] sm:$0xff]  ;;  %p2876_p1 = scmp.lt.s32.totalorder %s2874_s25, %s2870_s19 }
  0x1f   : > { %218 = vst.msk [vmem:[#allocation2 + $0x18] sm:$0xff] %vm213_vm1, %v2950_v2  ;;  %v206_v28 = vld [vmem:[%s3038_s30 + $0xc8] sm:$0xff]  ;;  %v181_v30 = vld [vmem:[%s3038_s30] sm:$0xff]  ;;  %v192_v37 = vld [vmem:[%s3038_s30 + $0x58] sm:$0xff]  ;;  %p2872_p12 = pnand %p2871_p11, %p3011_p5 }
  0x20   : > { %219 = vst.msk [vmem:[#allocation2 + $0x20] sm:$0xff] %vm213_vm1, %v2950_v2  ;;  %v182_v32 = vld [vmem:[%s3038_s30 + $0x8] sm:$0xff]  ;;  %v199_v40 = vld [vmem:[%s3038_s30 + $0x90] sm:$0xff]  ;;  %v200_v42 = vld [vmem:[%s3038_s30 + $0x98] sm:$0xff]  ;;  %p2877_p2 = por %p2876_p1, %p2875_p0 }
  0x21   : > { %220 = vst.msk [vmem:[#allocation2 + $0x28] sm:$0x3] %vm216_vm2, %v2950_v2  ;;  %v207_v44 = vld [vmem:[%s3038_s30 + $0xd0] sm:$0xff]  ;;  %v208_v45 = vld [vmem:[%s3038_s30 + $0xd8] sm:$0xff]  ;;  %v193_v49 = vld [vmem:[%s3038_s30 + $0x60] sm:$0xff]  ;;  %p2873_p13 = pneg %p2872_p12 }
  0x22   : > { %221 = vst.msk [vmem:[#allocation2 + $0x30] sm:$0xff] %vm213_vm1, %v2950_v2  ;;  %v351_v8 = vld [vmem:[#allocation2 + $0x1] sm:$0xff]  ;;  %v183_v46 = vld [vmem:[%s3038_s30 + $0x10] sm:$0xff]  ;;  %v184_v47 = vld [vmem:[%s3038_s30 + $0x18] sm:$0xff] }
  0x23   : > { %222 = vst.msk [vmem:[#allocation2 + $0x38] sm:$0xff] %vm213_vm1, %v2950_v2  ;;  %v352_v9 = vld [vmem:[#allocation2 + $0x9] sm:$0xff]  ;;  %v201_v53 = vld [vmem:[%s3038_s30 + $0xa0] sm:$0xff]  ;;  %v2649_v18 = vld [vmem:[%s3843_s1 + $0x18] sm:$0xf]  ;;  %p2878_p3 = pnand %p2877_p2, %p2873_p13 }
  0x24   : > { %v359_v5 = vld [vmem:[#allocation2 + $0x61] sm:$0xff]  ;;  %223 = vst.msk [vmem:[#allocation2 + $0x40] sm:$0x3] %vm216_vm2, %v2950_v2  ;;  %v383_v11 = vpack.c.bf16 %v352_v9, %v351_v8 }
  0x25   : > { %v360_v6 = vld [vmem:[#allocation2 + $0x69] sm:$0xff]  ;;  %224 = vst.msk [vmem:[#allocation2 + $0x48] sm:$0xff] %vm213_vm1, %v2950_v2  ;;  %v209_v57 = vld [vmem:[%s3038_s30 + $0xe0] sm:$0xff] }
  0x26   : > { %v3062_v7 = vpack.c.bf16 %v360_v6, %v359_v5  ;;  %225 = vst.msk [vmem:[#allocation2 + $0x50] sm:$0xff] %vm213_vm1, %v2950_v2  ;;  %2549 = vmatmul.msk.bf16.vlgmr.msra.gmra.mxu0 %vm213_vm1, %v383_v11  ;;  %v194_v51 = vld [vmem:[%s3038_s30 + $0x68] sm:$0xff]  ;;  %v185_v62 = vld [vmem:[%s3038_s30 + $0x20] sm:$0xff] }
  0x27   : > { %226 = vst.msk [vmem:[#allocation2 + $0x58] sm:$0x3] %vm216_vm2, %v2950_v2  ;;  %v202_v56 = vld [vmem:[%s3038_s30 + $0xa8] sm:$0xff] }
  0x28   : > { %2553 = vmatmul.msk.bf16.vlgmr.msra.gmra.mxu1 %vm213_vm1, %v3062_v7  ;;  %230 = vst.msk [vmem:[#allocation2 + $0x78] sm:$0xff] %vm213_vm1, %v2950_v2  ;;  %v210_v60 = vld [vmem:[%s3038_s30 + $0xe8] sm:$0xff] }
  0x29   : > { %231 = vst.msk [vmem:[#allocation2 + $0x80] sm:$0xff] %vm213_vm1, %v2950_v2  ;;  %v186_v1 = vld [vmem:[%s3038_s30 + $0x28] sm:$0xff] }
  0x2a   : > { %232 = vst.msk [vmem:[#allocation2 + $0x88] sm:$0x3] %vm216_vm2, %v2950_v2 }
  0x2b   : > { %233 = vst.msk [vmem:[#allocation2 + $0x90] sm:$0xff] %vm213_vm1, %v2950_v2 }
  0x2c   : > { %234 = vst.msk [vmem:[#allocation2 + $0x98] sm:$0xff] %vm213_vm1, %v2950_v2 }
  0x2d   : > { %235 = vst.msk [vmem:[#allocation2 + $0xa0] sm:$0x3] %vm216_vm2, %v2950_v2 }
  0x2e   : > { %236 = vst.msk [vmem:[#allocation2 + $0xa8] sm:$0xff] %vm213_vm1, %v2950_v2 }
  0x2f   : > { %237 = vst.msk [vmem:[#allocation2 + $0xb0] sm:$0xff] %vm213_vm1, %v2950_v2 }
  0x30   : > { %238 = vst.msk [vmem:[#allocation2 + $0xb8] sm:$0x3] %vm216_vm2, %v2950_v2 }
  0x31   : > { %239 = vst.msk [vmem:[#allocation2 + $0xc0] sm:$0xff] %vm213_vm1, %v2950_v2 }
  0x32   : > { %240 = vst.msk [vmem:[#allocation2 + $0xc8] sm:$0xff] %vm213_vm1, %v2950_v2 }
  0x33   : > { %241 = vst.msk [vmem:[#allocation2 + $0xd0] sm:$0x3] %vm216_vm2, %v2950_v2 }
  0x34   : > { %242 = vst.msk [vmem:[#allocation2 + $0xd8] sm:$0xff] %vm213_vm1, %v2950_v2 }
  0x35   : > { %243 = vst.msk [vmem:[#allocation2 + $0xe0] sm:$0xff] %vm213_vm1, %v2950_v2 }
  0x36   : > { %244 = vst.msk [vmem:[#allocation2 + $0xe8] sm:$0x3] %vm216_vm2, %v2950_v2 }
  0x37   : > { %245 = vst.msk [vmem:[#allocation2 + $0xf0] sm:$0xff] %vm213_vm1, %v2950_v2 }
  0x38   : > { %246 = vst.msk [vmem:[#allocation2 + $0xf8] sm:$0xff] %vm213_vm1, %v2950_v2 }
  0x39   : > { %247 = vst.msk [vmem:[#allocation2 + $0x100] sm:$0x3] %vm216_vm2, %v2950_v2 }
  0x3a   : > { %248 = vst.msk [vmem:[#allocation2 + $0x108] sm:$0xff] %vm213_vm1, %v2950_v2 }
  0x3b   : > { %249 = vst.msk [vmem:[#allocation2 + $0x110] sm:$0xff] %vm213_vm1, %v2950_v2 }
  0x3c   : > { %250 = vst.msk [vmem:[#allocation2 + $0x118] sm:$0x3] %vm216_vm2, %v2950_v2 }
  0x3d   : > { %251 = vst.msk [vmem:[#allocation2 + $0x120] sm:$0xff] %vm213_vm1, %v2950_v2 }
  0x3e   : > { %252 = vst.msk [vmem:[#allocation2 + $0x128] sm:$0xff] %vm213_vm1, %v2950_v2 }
  0x3f   : > { %253 = vst.msk [vmem:[#allocation2 + $0x130] sm:$0x3] %vm216_vm2, %v2950_v2 }
  0x40   : > { %254 = vst.msk [vmem:[#allocation2 + $0x138] sm:$0xff] %vm213_vm1, %v2950_v2 }
  0x41   : > { %255 = vst.msk [vmem:[#allocation2 + $0x140] sm:$0xff] %vm213_vm1, %v2950_v2 }
  0x42   : > { %256 = vst.msk [vmem:[#allocation2 + $0x148] sm:$0x3] %vm216_vm2, %v2950_v2 }
  0x43   : > { %257 = vst.msk [vmem:[#allocation2 + $0x150] sm:$0xff] %vm213_vm1, %v2950_v2 }
  0x44   : > { %258 = vst.msk [vmem:[#allocation2 + $0x158] sm:$0xff] %vm213_vm1, %v2950_v2 }
  0x45   : > { %259 = vst.msk [vmem:[#allocation2 + $0x160] sm:$0x3] %vm216_vm2, %v2950_v2 }
  0x46   : > { %260 = vst.msk [vmem:[#allocation2 + $0x168] sm:$0xff] %vm213_vm1, %v2950_v2 }
  0x47   : > { %261 = vst.msk [vmem:[#allocation2 + $0x170] sm:$0xff] %vm213_vm1, %v2950_v2 }
  0x48   : > { %262 = vst.msk [vmem:[#allocation2 + $0x178] sm:$0x3] %vm216_vm2, %v2950_v2 }
  0x49   : > { %263 = vst.msk [vmem:[#allocation2 + $0x180] sm:$0xff] %vm213_vm1, %v2950_v2 }
  0x4a   : > { %264 = vst.msk [vmem:[#allocation2 + $0x188] sm:$0xff] %vm213_vm1, %v2950_v2 }
  0x4b   : > { %265 = vst.msk [vmem:[#allocation2 + $0x190] sm:$0x3] %vm216_vm2, %v2950_v2 }
  0x4c   : > { %266 = vst.msk [vmem:[#allocation2 + $0x198] sm:$0xff] %vm213_vm1, %v2950_v2 }
  0x4d   : > { %267 = vst.msk [vmem:[#allocation2 + $0x1a0] sm:$0xff] %vm213_vm1, %v2950_v2 }
  0x4e   : > { %268 = vst.msk [vmem:[#allocation2 + $0x1a8] sm:$0x3] %vm216_vm2, %v2950_v2 }
  0x4f   : > { %284 = vst.msk [vmem:[#allocation2 + $0xc1] sm:$0xff] %vm213_vm1, %v195_v19  ;;  %v2666_v19 = vld [vmem:[%s3843_s1 + $0x1c] sm:$0xf] }
  0x50   : > { %285 = vst.msk [vmem:[#allocation2 + $0xc9] sm:$0xff] %vm213_vm1, %v196_v20  ;;  %v2632_v20 = vld [vmem:[%s3843_s1 + $0x14] sm:$0xf] }
  0x51   : > { %292 = vst.msk [vmem:[#allocation2 + $0x121] sm:$0xff] %vm213_vm1, %v203_v21 }
  0x52   : > { %293 = vst.msk [vmem:[#allocation2 + $0x129] sm:$0xff] %vm213_vm1, %v204_v22  ;;  %v1670_v22 = vsel %vm449_vm0, %v2649_v18, 0 }
  0x53   : > { %278 = vst.msk [vmem:[#allocation2 + $0x79] sm:$0xff] %vm213_vm1, %v189_v23  ;;  %v1892_v23 = vsel %vm449_vm0, %v2666_v19, 0 }
  0x54   : > { %279 = vst.msk [vmem:[#allocation2 + $0x81] sm:$0xff] %vm213_vm1, %v190_v24  ;;  %v1447_v24 = vsel %vm449_vm0, %v2632_v20, 0 }
  0x55   : > { %286 = vst.msk [vmem:[#allocation2 + $0xd9] sm:$0xff] %vm213_vm1, %v197_v25  ;;  %v2683_v25 = vld [vmem:[%s3843_s1 + $0x20] sm:$0xf]  ;;  %1456 = vmatpush.bf16.msra.mxu1 %v1447_v24 }
  0x56   : > { %v367_v29 = vld [vmem:[#allocation2 + $0xc1] sm:$0xff]  ;;  %287 = vst.msk [vmem:[#allocation2 + $0xe1] sm:$0xff] %vm213_vm1, %v198_v26  ;;  %v2114_v26 = vsel %vm449_vm0, %v2683_v25, 0 }
  0x57   : > { %v368_v31 = vld [vmem:[#allocation2 + $0xc9] sm:$0xff]  ;;  %294 = vst.msk [vmem:[#allocation2 + $0x139] sm:$0xff] %vm213_vm1, %v205_v27  ;;  %2123 = vmatpush.bf16.msra.mxu0 %v2114_v26 }
  0x58   : > { %v3186_v33 = vpack.c.bf16 %v368_v31, %v367_v29  ;;  %v375_v34 = vld [vmem:[#allocation2 + $0x121] sm:$0xff]  ;;  %295 = vst.msk [vmem:[#allocation2 + $0x141] sm:$0xff] %vm213_vm1, %v206_v28 }
  0x59   : > { %v376_v36 = vld [vmem:[#allocation2 + $0x129] sm:$0xff]  ;;  %270 = vst.msk [vmem:[#allocation2 + $0x19] sm:$0xff] %vm213_vm1, %v181_v30 }
  0x5a   : > { %2557 = vmatmul.msk.bf16.vlgmr.msra.gmra.mxu2 %vm213_vm1, %v3186_v33  ;;  %v3194_v38 = vpack.c.bf16 %v376_v36, %v375_v34  ;;  %v361_v39 = vld [vmem:[#allocation2 + $0x79] sm:$0xff]  ;;  %271 = vst.msk [vmem:[#allocation2 + $0x21] sm:$0xff] %vm213_vm1, %v182_v32 }
  0x5b   : > { %v362_v41 = vld [vmem:[#allocation2 + $0x81] sm:$0xff]  ;;  %280 = vst.msk [vmem:[#allocation2 + $0x91] sm:$0xff] %vm213_vm1, %v191_v35  ;;  %1679 = vmatpush.bf16.msra.mxu2 %v1670_v22 }
  0x5c   : > { %2561 = vmatmul.msk.bf16.vlgmr.msra.gmra.mxu3 %vm213_vm1, %v3194_v38  ;;  %v3202_v43 = vpack.c.bf16 %v362_v41, %v361_v39  ;;  %281 = vst.msk [vmem:[#allocation2 + $0x99] sm:$0xff] %vm213_vm1, %v192_v37  ;;  %v369_v54 = vld [vmem:[#allocation2 + $0xd9] sm:$0xff]  ;;  %v303_v35 = vld [vmem:[#allocation2 + $0x8] sm:$0xff] }
  0x5d   : > { %288 = vst.msk [vmem:[#allocation2 + $0xf1] sm:$0xff] %vm213_vm1, %v199_v40  ;;  %v370_v55 = vld [vmem:[#allocation2 + $0xe1] sm:$0xff]  ;;  %1901 = vmatpush.bf16.msra.mxu3 %v1892_v23  ;;  %v683_v40 = vld [vmem:[#allocation2 + $0xa] sm:$0xff] }
  0x5e   : > { %2554 = vmatmul.msk.bf16.gmra.mxu1 %vm213_vm1, %v3202_v43  ;;  %289 = vst.msk [vmem:[#allocation2 + $0xf9] sm:$0xff] %vm213_vm1, %v200_v42  ;;  %v377_v58 = vld [vmem:[#allocation2 + $0x139] sm:$0xff]  ;;  %v3230_v61 = vpack.c.bf16 %v370_v55, %v369_v54  ;;  %v682_v39 = vld [vmem:[#allocation2 + $0x2] sm:$0xff] }
  0x5f   : > { %296 = vst.msk [vmem:[#allocation2 + $0x151] sm:$0xff] %vm213_vm1, %v207_v44  ;;  %v378_v59 = vld [vmem:[#allocation2 + $0x141] sm:$0xff]  ;;  %v714_v44 = vpack.c.bf16 %v683_v40, %v682_v39 }
  0x60   : > { %v353_v48 = vld [vmem:[#allocation2 + $0x19] sm:$0xff]  ;;  %297 = vst.msk [vmem:[#allocation2 + $0x159] sm:$0xff] %vm213_vm1, %v208_v45  ;;  %v3236_v2 = vpack.c.bf16 %v378_v59, %v377_v58 }
  0x61   : > { %v354_v50 = vld [vmem:[#allocation2 + $0x21] sm:$0xff]  ;;  %272 = vst.msk [vmem:[#allocation2 + $0x31] sm:$0xff] %vm213_vm1, %v183_v46  ;;  %v904_v41 = vld [vmem:[#allocation2 + $0x18] sm:$0xff] }
  0x62   : > { %v3218_v52 = vpack.c.bf16 %v354_v50, %v353_v48  ;;  %273 = vst.msk [vmem:[#allocation2 + $0x39] sm:$0xff] %vm213_vm1, %v184_v47  ;;  %v363_v63 = vld [vmem:[#allocation2 + $0x91] sm:$0xff]  ;;  %v302_v34 = vld [vmem:[#allocation2] sm:$0xff] }
  0x63   : > { %282 = vst.msk [vmem:[#allocation2 + $0xa9] sm:$0xff] %vm213_vm1, %v193_v49  ;;  %v364_v0 = vld [vmem:[#allocation2 + $0x99] sm:$0xff]  ;;  %v334_v37 = vpack.c.bf16 %v303_v35, %v302_v34  ;;  %v685_v47 = vld [vmem:[#allocation2 + $0x22] sm:$0xff]  ;;  %v914_v24 = vld [vmem:[#allocation2 + $0x90] sm:$0xff] }
  0x64   : > { %2550 = vmatmul.msk.bf16.gmra.mxu0 %vm213_vm1, %v3218_v52  ;;  %283 = vst.msk [vmem:[#allocation2 + $0xb1] sm:$0xff] %vm213_vm1, %v194_v51  ;;  %v3242_v3 = vpack.c.bf16 %v364_v0, %v363_v63  ;;  %v371_v8 = vld [vmem:[#allocation2 + $0xf1] sm:$0xff]  ;;  %v905_v42 = vld [vmem:[#allocation2 + $0x20] sm:$0xff] }
  0x65   : > { %290 = vst.msk [vmem:[#allocation2 + $0x109] sm:$0xff] %vm213_vm1, %v201_v53  ;;  %v372_v9 = vld [vmem:[#allocation2 + $0xf9] sm:$0xff]  ;;  %v936_v45 = vpack.c.bf16 %v905_v42, %v904_v41 }
  0x66   : > { %291 = vst.msk [vmem:[#allocation2 + $0x111] sm:$0xff] %vm213_vm1, %v202_v56  ;;  %v379_v10 = vld [vmem:[#allocation2 + $0x151] sm:$0xff]  ;;  %v3253_v12 = vpack.c.bf16 %v372_v9, %v371_v8  ;;  %v684_v46 = vld [vmem:[#allocation2 + $0x1a] sm:$0xff] }
  0x67   : > { %298 = vst.msk [vmem:[#allocation2 + $0x169] sm:$0xff] %vm213_vm1, %v209_v57  ;;  %v380_v11 = vld [vmem:[#allocation2 + $0x159] sm:$0xff]  ;;  %v3301_v50 = vpack.c.bf16 %v685_v47, %v684_v46  ;;  %v691_v8 = vld [vmem:[#allocation2 + $0x6a] sm:$0xff] }
  0x68   : > { %299 = vst.msk [vmem:[#allocation2 + $0x171] sm:$0xff] %vm213_vm1, %v210_v60  ;;  %v355_v4 = vld [vmem:[#allocation2 + $0x31] sm:$0xff]  ;;  %v3255_v15 = vpack.c.bf16 %v380_v11, %v379_v10  ;;  %v910_v60 = vld [vmem:[#allocation2 + $0x60] sm:$0xff] }
  0x69   : > { %274 = vst.msk [vmem:[#allocation2 + $0x49] sm:$0xff] %vm213_vm1, %v185_v62  ;;  %v356_v5 = vld [vmem:[#allocation2 + $0x39] sm:$0xff]  ;;  %v906_v48 = vld [vmem:[#allocation2 + $0x30] sm:$0xff]  ;;  %v911_v62 = vld [vmem:[#allocation2 + $0x68] sm:$0xff] }
  0x6a   : > { %2558 = vmatmul.msk.bf16.gmra.mxu2 %vm213_vm1, %v3230_v61  ;;  %275 = vst.msk [vmem:[#allocation2 + $0x51] sm:$0xff] %vm213_vm1, %v186_v1  ;;  %v3249_v6 = vpack.c.bf16 %v356_v5, %v355_v4  ;;  %v365_v13 = vld [vmem:[#allocation2 + $0xa9] sm:$0xff]  ;;  %v907_v49 = vld [vmem:[#allocation2 + $0x38] sm:$0xff]  ;;  %v3329_v1 = vpack.c.bf16 %v911_v62, %v910_v60  ;;  %v913_v10 = vld [vmem:[#allocation2 + $0x80] sm:$0xff] }
  0x6b   : > { %v366_v14 = vld [vmem:[#allocation2 + $0xb1] sm:$0xff]  ;;  %v3303_v51 = vpack.c.bf16 %v907_v49, %v906_v48  ;;  %v687_v53 = vld [vmem:[#allocation2 + $0x3a] sm:$0xff]  ;;  %v690_v5 = vld [vmem:[#allocation2 + $0x62] sm:$0xff] }
  0x6c   : > { %2562 = vmatmul.msk.bf16.gmra.mxu3 %vm213_vm1, %v3236_v2  ;;  %v3259_v16 = vpack.c.bf16 %v366_v14, %v365_v13  ;;  %v373_v28 = vld [vmem:[#allocation2 + $0x109] sm:$0xff]  ;;  %v912_v9 = vld [vmem:[#allocation2 + $0x78] sm:$0xff]  ;;  %v3343_v11 = vpack.c.bf16 %v691_v8, %v690_v5  ;;  %v918_v60 = vld [vmem:[#allocation2 + $0xc0] sm:$0xff] }
  0x6d   : > { %v374_v29 = vld [vmem:[#allocation2 + $0x111] sm:$0xff]  ;;  %v3347_v14 = vpack.c.bf16 %v913_v10, %v912_v9  ;;  %v692_v20 = vld [vmem:[#allocation2 + $0x7a] sm:$0xff]  ;;  %v916_v42 = vld [vmem:[#allocation2 + $0xa8] sm:$0xff] }
  0x6e   : > { %2555 = vmatmul.msk.bf16.gmra.mxu1 %vm213_vm1, %v3242_v3  ;;  %v381_v30 = vld [vmem:[#allocation2 + $0x169] sm:$0xff]  ;;  %v3285_v32 = vpack.c.bf16 %v374_v29, %v373_v28  ;;  %v915_v25 = vld [vmem:[#allocation2 + $0x98] sm:$0xff] }
  0x6f   : > { %v382_v31 = vld [vmem:[#allocation2 + $0x171] sm:$0xff]  ;;  %v3373_v29 = vpack.c.bf16 %v915_v25, %v914_v24  ;;  %v695_v39 = vld [vmem:[#allocation2 + $0x9a] sm:$0xff]  ;;  %v919_v62 = vld [vmem:[#allocation2 + $0xc8] sm:$0xff] }
  0x70   : > { %v357_v17 = vld [vmem:[#allocation2 + $0x49] sm:$0xff]  ;;  %v3287_v36 = vpack.c.bf16 %v382_v31, %v381_v30  ;;  %v3429_v9 = vpack.c.bf16 %v919_v62, %v918_v60 }
  0x71   : > { %v358_v21 = vld [vmem:[#allocation2 + $0x51] sm:$0xff]  ;;  %v908_v54 = vld [vmem:[#allocation2 + $0x48] sm:$0xff] }
  0x72   : > { %v3281_v27 = vpack.c.bf16 %v358_v21, %v357_v17  ;;  %v909_v55 = vld [vmem:[#allocation2 + $0x50] sm:$0xff]  ;;  %v693_v21 = vld [vmem:[#allocation2 + $0x82] sm:$0xff]  ;;  %3857 = vst [vmem:[#allocation13_spill] sm:$0xff] %v3429_v9 }
  0x73   : > { %v3315_v57 = vpack.c.bf16 %v909_v55, %v908_v54  ;;  %v688_v58 = vld [vmem:[#allocation2 + $0x4a] sm:$0xff]  ;;  %v689_v59 = vld [vmem:[#allocation2 + $0x52] sm:$0xff]  ;;  %v3369_v26 = vpack.c.bf16 %v693_v21, %v692_v20  ;;  %v698_v25 = vld [vmem:[#allocation2 + $0xc2] sm:$0xff] }
  0x74   : > { %2551 = vmatmul.msk.bf16.gmra.mxu0 %vm213_vm1, %v3249_v6  ;;  %v3325_v63 = vpack.c.bf16 %v689_v59, %v688_v58  ;;  %v696_v54 = vld [vmem:[#allocation2 + $0xaa] sm:$0xff]  ;;  %v697_v55 = vld [vmem:[#allocation2 + $0xb2] sm:$0xff] }
  0x75   : > { %v3425_v5 = vpack.c.bf16 %v697_v55, %v696_v54  ;;  %v920_v54 = vld [vmem:[#allocation2 + $0xd8] sm:$0xff]  ;;  %v921_v55 = vld [vmem:[#allocation2 + $0xe0] sm:$0xff] }
  0x7a   : > { %2559 = vmatmul.msk.bf16.gmra.mxu2 %vm213_vm1, %v3253_v12 }
  0x7c   : > { %2563 = vmatmul.msk.bf16.gmra.mxu3 %vm213_vm1, %v3255_v15 }
  0x7e   : > { %2556 = vmatmul.msk.bf16.gmra.mxu1 %vm213_vm1, %v3259_v16 }
  0x84   : > { %2552 = vmatmul.msk.bf16.gmra.mxu0 %vm213_vm1, %v3281_v27 }
  0x8a   : > { %2560 = vmatmul.msk.bf16.gmra.mxu2 %vm213_vm1, %v3285_v32 }
  0x8c   : > { %2564 = vmatmul.msk.bf16.gmra.mxu3 %vm213_vm1, %v3287_v36 }
  0x8e   : > { %2565 = vmatmul.msk.bf16.vlgmr.msrb.gmra.mxu1 %vm213_vm1, %v334_v37  ;;  %v694_v37 = vld [vmem:[#allocation2 + $0x92] sm:$0xff] }
  0x94   : > { %2616 = vmatmul.msk.bf16.vlgmr.msrb.gmra.mxu0 %vm213_vm1, %v3218_v52  ;;  %v686_v52 = vld [vmem:[#allocation2 + $0x32] sm:$0xff] }
  0x95   : > { %v3313_v56 = vpack.c.bf16 %v687_v53, %v686_v52 }
  0x9a   : > { %2582 = vmatmul.msk.bf16.vlgmr.msrb.gmra.mxu2 %vm213_vm1, %v714_v44  ;;  %v917_v44 = vld [vmem:[#allocation2 + $0xb0] sm:$0xff] }
  0x9b   : > { %v3401_v47 = vpack.c.bf16 %v917_v44, %v916_v42 }
  0x9c   : > { %2599 = vmatmul.msk.bf16.vlgmr.msrb.gmra.mxu3 %vm213_vm1, %v936_v45 }
  0x9e   : > { %2566 = vmatmul.msk.bf16.gmra.mxu1 %vm213_vm1, %v936_v45  ;;  %v3397_v45 = vpack.c.bf16 %v695_v39, %v694_v37  ;;  %v699_v37 = vld [vmem:[#allocation2 + $0xca] sm:$0xff] }
  0x9f   : > { %v3448_v60 = vpack.c.bf16 %v699_v37, %v698_v25 }
  0xa1   : > { %3859 = vst [vmem:[#allocation15_spill] sm:$0xff] %v3448_v60 }
  0xa3   : > { %v3335_v4 = vpop.f32.mrf.mxu0 }
  0xa4   : > { %2617 = vmatmul.msk.bf16.gmra.mxu0 %vm213_vm1, %v3249_v6 }
  0xa5   : > { %v3327_v0 = vpop.f32.mrf.mxu1 }
  0xaa   : > { %2583 = vmatmul.msk.bf16.gmra.mxu2 %vm213_vm1, %v3301_v50 }
  0xab   : > { %v3345_v13 = vpop.f32.mrf.mxu0 }
  0xac   : > { %2600 = vmatmul.msk.bf16.gmra.mxu3 %vm213_vm1, %v3303_v51 }
  0xae   : > { %2567 = vmatmul.msk.bf16.gmra.mxu1 %vm213_vm1, %v3303_v51 }
  0xb4   : > { %2618 = vmatmul.msk.bf16.gmra.mxu0 %vm213_vm1, %v3281_v27 }
  0xba   : > { %2584 = vmatmul.msk.bf16.gmra.mxu2 %vm213_vm1, %v3313_v56 }
  0xbc   : > { %2601 = vmatmul.msk.bf16.gmra.mxu3 %vm213_vm1, %v3315_v57 }
  0xbe   : > { %2568 = vmatmul.msk.bf16.gmra.mxu1 %vm213_vm1, %v3315_v57 }
  0xc4   : > { %2619 = vmatmul.msk.bf16.gmra.mxu0 %vm213_vm1, %v3062_v7  ;;  %v3339_v7 = vpop.f32.mrf.mxu1 }
  0xca   : > { %2585 = vmatmul.msk.bf16.gmra.mxu2 %vm213_vm1, %v3325_v63 }
  0xcc   : > { %2602 = vmatmul.msk.bf16.gmra.mxu3 %vm213_vm1, %v3329_v1 }
  0xce   : > { %2569 = vmatmul.msk.bf16.gmra.mxu1 %vm213_vm1, %v3329_v1 }
  0xd4   : > { %2620 = vmatmul.msk.bf16.gmra.mxu0 %vm213_vm1, %v3202_v43 }
  0xda   : > { %2586 = vmatmul.msk.bf16.gmra.mxu2 %vm213_vm1, %v3343_v11 }
  0xdb   : > { %v3351_v17 = vpop.f32.mrf.mxu1 }
  0xdc   : > { %2603 = vmatmul.msk.bf16.gmra.mxu3 %vm213_vm1, %v3347_v14 }
  0xdd   : > { %v3355_v18 = vpop.f32.mrf.mxu2 }
  0xde   : > { %2570 = vmatmul.msk.bf16.gmra.mxu1 %vm213_vm1, %v3347_v14 }
  0xdf   : > { %v3359_v43 = vpop.f32.mrf.mxu3 }
  0xe1   : > { %v3361_v19 = vpop.f32.mrf.mxu0 }
  0xe3   : > { %v3363_v22 = vpop.f32.mrf.mxu1 }
  0xe4   : > { %2621 = vmatmul.msk.bf16.gmra.mxu0 %vm213_vm1, %v3242_v3 }
  0xe5   : > { %v3367_v23 = vpop.f32.mrf.mxu2 }
  0xe7   : > { %v3371_v28 = vpop.f32.mrf.mxu3 }
  0xe9   : > { %v3375_v30 = vpop.f32.mrf.mxu0 }
  0xea   : > { %2587 = vmatmul.msk.bf16.gmra.mxu2 %vm213_vm1, %v3369_v26 }
  0xeb   : > { %v3379_v31 = vpop.f32.mrf.mxu1 }
  0xec   : > { %2604 = vmatmul.msk.bf16.gmra.mxu3 %vm213_vm1, %v3373_v29 }
  0xed   : > { %v3383_v3 = vpop.f32.mrf.mxu2 }
  0xee   : > { %2571 = vmatmul.msk.bf16.gmra.mxu1 %vm213_vm1, %v3373_v29 }
  0xef   : > { %v3387_v34 = vpop.f32.mrf.mxu3 }
  0xf0   : > { %3853 = vst [vmem:[#allocation9_spill] sm:$0xff] %v3387_v34 }
  0xf1   : > { %v3389_v35 = vpop.f32.mrf.mxu0 }
  0xf3   : > { %v3391_v40 = vpop.f32.mrf.mxu1 }
  0xf4   : > { %2622 = vmatmul.msk.bf16.gmra.mxu0 %vm213_vm1, %v3259_v16 }
  0xf5   : > { %v3395_v41 = vpop.f32.mrf.mxu2 }
  0xf7   : > { %v3399_v46 = vpop.f32.mrf.mxu3 }
  0xf8   : > { %3854 = vst [vmem:[#allocation10_spill] sm:$0xff] %v3399_v46 }
  0xf9   : > { %v3403_v48 = vpop.f32.mrf.mxu0 }
  0xfa   : > { %2588 = vmatmul.msk.bf16.gmra.mxu2 %vm213_vm1, %v3397_v45 }
  0xfb   : > { %v3407_v49 = vpop.f32.mrf.mxu1 }
  0xfc   : > { %2605 = vmatmul.msk.bf16.gmra.mxu3 %vm213_vm1, %v3401_v47 }
  0xfd   : > { %v3411_v16 = vpop.f32.mrf.mxu2 }
  0xfe   : > { %2572 = vmatmul.msk.bf16.gmra.mxu1 %vm213_vm1, %v3401_v47 }
  0xff   : > { %v3415_v52 = vpop.f32.mrf.mxu3 }
 0x100   : > { %3855 = vst [vmem:[#allocation11_spill] sm:$0xff] %v3415_v52 }
 0x101   : > { %v3417_v53 = vpop.f32.mrf.mxu0 }
 0x103   : > { %v3419_v58 = vpop.f32.mrf.mxu1 }
 0x104   : > { %2623 = vmatmul.msk.bf16.gmra.mxu0 %vm213_vm1, %v3186_v33 }
 0x105   : > { %v3423_v59 = vpop.f32.mrf.mxu2 }
 0x107   : > { %v3427_v8 = vpop.f32.mrf.mxu3 }
 0x108   : > { %3856 = vst [vmem:[#allocation12_spill] sm:$0xff] %v3427_v8  ;;  %v3452_v8 = vpack.c.bf16 %v921_v55, %v920_v54 }
 0x109   : > { %v3431_v10 = vpop.f32.mrf.mxu0 }
 0x10a   : > { %2589 = vmatmul.msk.bf16.gmra.mxu2 %vm213_vm1, %v3425_v5  ;;  %3861 = vst [vmem:[#allocation17_spill] sm:$0xff] %v3452_v8 }
 0x10b   : > { %v602_v20 = vpop.f32.mrf.mxu1 }
 0x10c   : > { %2606 = vmatmul.msk.bf16.gmra.mxu3 %vm213_vm1, %v3429_v9 }
 0x10d   : > { %v3437_v33 = vpop.f32.mrf.mxu2 }
 0x10e   : > { %2573 = vmatmul.msk.bf16.gmra.mxu1 %vm213_vm1, %v3429_v9  ;;  %v603_v9 = vadd.f32 %v602_v20, %v3335_v4 }
 0x10f   : > { %v3441_v21 = vpop.f32.mrf.mxu3 }
 0x110   : > { %3858 = vst [vmem:[#allocation14_spill] sm:$0xff] %v3441_v21 }
 0x111   : > { %v1236_v24 = vpop.f32.mrf.mxu0 }
 0x113   : > { %v604_v39 = vpop.f32.mrf.mxu1 }
 0x114   : > { %2624 = vmatmul.msk.bf16.gmra.mxu0 %vm213_vm1, %v3230_v61  ;;  %v605_v42 = vadd.f32 %v604_v39, %v3345_v13 }
 0x115   : > { %v3446_v44 = vpop.f32.mrf.mxu2 }
 0x117   : > { %v3450_v62 = vpop.f32.mrf.mxu3 }
 0x118   : > { %3860 = vst [vmem:[#allocation16_spill] sm:$0xff] %v3450_v62  ;;  %v700_v62 = vld [vmem:[#allocation2 + $0xda] sm:$0xff] }
 0x119   : > { %v1238_v21 = vpop.f32.mrf.mxu0 }
 0x11a   : > { %2590 = vmatmul.msk.bf16.gmra.mxu2 %vm213_vm1, %v3448_v60  ;;  %v701_v60 = vld [vmem:[#allocation2 + $0xe2] sm:$0xff] }
 0x11b   : > { %v607_v52 = vpop.f32.mrf.mxu1 }
 0x11c   : > { %2607 = vmatmul.msk.bf16.gmra.mxu3 %vm213_vm1, %v3452_v8  ;;  %v608_v61 = vadd.f32 %v607_v52, %v3361_v19  ;;  %v922_v19 = vld [vmem:[#allocation2 + $0xf0] sm:$0xff]  ;;  %v923_v52 = vld [vmem:[#allocation2 + $0xf8] sm:$0xff] }
 0x11d   : > { %v792_v13 = vpop.f32.mrf.mxu2 }
 0x11e   : > { %v872_v39 = vadd.f32 %v792_v13, %v603_v9  ;;  %2574 = vmatmul.msk.bf16.gmra.mxu1 %vm213_vm1, %v3452_v8  ;;  %v3467_v13 = vpack.c.bf16 %v701_v60, %v700_v62 }
 0x11f   : > { %v1014_v25 = vpop.f32.mrf.mxu3 }
 0x120   : > { %v1094_v37 = vadd.f32 %v1014_v25, %v872_v39  ;;  %v3469_v39 = vpack.c.bf16 %v923_v52, %v922_v19  ;;  %v703_v19 = vld [vmem:[#allocation2 + $0xfa] sm:$0xff] }
 0x121   : > { %v1241_v54 = vpop.f32.mrf.mxu0 }
 0x122   : > { %v3462_v55 = vadd.f32 %v1236_v24, %v1094_v37 }
 0x123   : > { %v609_v46 = vpop.f32.mrf.mxu1 }
 0x124   : > { %2625 = vmatmul.msk.bf16.gmra.mxu0 %vm213_vm1, %v3253_v12  ;;  %v610_v4 = vadd.f32 %v609_v46, %v3375_v30 }
 0x125   : > { %v794_v20 = vpop.f32.mrf.mxu2 }
 0x126   : > { %v873_v9 = vadd.f32 %v794_v20, %v605_v42  ;;  %v702_v20 = vld [vmem:[#allocation2 + $0xf2] sm:$0xff] }
 0x127   : > { %v1016_v8 = vpop.f32.mrf.mxu3 }
 0x128   : > { %v1095_v34 = vadd.f32 %v1016_v8, %v873_v9  ;;  %v925_v9 = vld [vmem:[#allocation2 + $0x110] sm:$0xff] }
 0x129   : > { %v1243_v24 = vpop.f32.mrf.mxu0 }
 0x12a   : > { %2591 = vmatmul.msk.bf16.gmra.mxu2 %vm213_vm1, %v3467_v13  ;;  %v3473_v25 = vadd.f32 %v1238_v21, %v1095_v34 }
 0x12b   : > { %v612_v37 = vpop.f32.mrf.mxu1 }
 0x12c   : > { %3862 = vst [vmem:[#allocation18_spill] sm:$0xff] %v3473_v25  ;;  %2608 = vmatmul.msk.bf16.gmra.mxu3 %vm213_vm1, %v3469_v39  ;;  %v613_v12 = vadd.f32 %v612_v37, %v3389_v35  ;;  %v924_v35 = vld [vmem:[#allocation2 + $0x108] sm:$0xff]  ;;  %v3485_v37 = vpack.c.bf16 %v703_v19, %v702_v20 }
 0x12d   : > { %v797_v30 = vpop.f32.mrf.mxu2 }
 0x12e   : > { %v874_v46 = vadd.f32 %v797_v30, %v608_v61  ;;  %2575 = vmatmul.msk.bf16.gmra.mxu1 %vm213_vm1, %v3469_v39 }
 0x12f   : > { %v1019_v8 = vpop.f32.mrf.mxu3 }
 0x130   : > { %v1096_v42 = vadd.f32 %v1019_v8, %v874_v46  ;;  %v3487_v46 = vpack.c.bf16 %v925_v9, %v924_v35  ;;  %v704_v35 = vld [vmem:[#allocation2 + $0x10a] sm:$0xff]  ;;  %v705_v9 = vld [vmem:[#allocation2 + $0x112] sm:$0xff] }
 0x131   : > { %v1246_v60 = vpop.f32.mrf.mxu0 }
 0x132   : > { %v3480_v62 = vadd.f32 %v1241_v54, %v1096_v42 }
 0x133   : > { %v614_v34 = vpop.f32.mrf.mxu1 }
 0x134   : > { %2626 = vmatmul.msk.bf16.gmra.mxu0 %vm213_vm1, %v3285_v32  ;;  %v615_v21 = vadd.f32 %v614_v34, %v3403_v48 }
 0x135   : > { %v799_v52 = vpop.f32.mrf.mxu2 }
 0x136   : > { %v875_v61 = vadd.f32 %v799_v52, %v610_v4 }
 0x137   : > { %v1021_v30 = vpop.f32.mrf.mxu3 }
 0x138   : > { %v1097_v25 = vadd.f32 %v1021_v30, %v875_v61  ;;  %v927_v30 = vld [vmem:[#allocation2 + $0x128] sm:$0xff] }
 0x139   : > { %v1248_v54 = vpop.f32.mrf.mxu0 }
 0x13a   : > { %2592 = vmatmul.msk.bf16.gmra.mxu2 %vm213_vm1, %v3485_v37  ;;  %v3491_v8 = vadd.f32 %v1243_v24, %v1097_v25 }
 0x13b   : > { %v617_v42 = vpop.f32.mrf.mxu1 }
 0x13c   : > { %3863 = vst [vmem:[#allocation19_spill] sm:$0xff] %v3491_v8  ;;  %2609 = vmatmul.msk.bf16.gmra.mxu3 %vm213_vm1, %v3487_v46  ;;  %v618_v32 = vadd.f32 %v617_v42, %v3417_v53  ;;  %v926_v53 = vld [vmem:[#allocation2 + $0x120] sm:$0xff]  ;;  %v3503_v42 = vpack.c.bf16 %v705_v9, %v704_v35 }
 0x13d   : > { %v802_v48 = vpop.f32.mrf.mxu2 }
 0x13e   : > { %v876_v4 = vadd.f32 %v802_v48, %v613_v12  ;;  %2576 = vmatmul.msk.bf16.gmra.mxu1 %vm213_vm1, %v3487_v46 }
 0x13f   : > { %v1024_v20 = vpop.f32.mrf.mxu3 }
 0x140   : > { %v1098_v19 = vadd.f32 %v1024_v20, %v876_v4  ;;  %v3505_v4 = vpack.c.bf16 %v927_v30, %v926_v53  ;;  %v707_v53 = vld [vmem:[#allocation2 + $0x12a] sm:$0xff] }
 0x141   : > { %v1251_v34 = vpop.f32.mrf.mxu0 }
 0x142   : > { %v3498_v52 = vadd.f32 %v1246_v60, %v1098_v19 }
 0x143   : > { %v619_v24 = vpop.f32.mrf.mxu1 }
 0x144   : > { %2627 = vmatmul.msk.bf16.gmra.mxu0 %vm213_vm1, %v3194_v38  ;;  %v620_v25 = vadd.f32 %v619_v24, %v3431_v10 }
 0x145   : > { %v804_v61 = vpop.f32.mrf.mxu2 }
 0x146   : > { %v877_v12 = vadd.f32 %v804_v61, %v615_v21  ;;  %v706_v61 = vld [vmem:[#allocation2 + $0x122] sm:$0xff] }
 0x147   : > { %v1026_v48 = vpop.f32.mrf.mxu3 }
 0x148   : > { %v1099_v8 = vadd.f32 %v1026_v48, %v877_v12  ;;  %v929_v12 = vld [vmem:[#allocation2 + $0x140] sm:$0xff] }
 0x149   : > { %v1253_v60 = vpop.f32.mrf.mxu0 }
 0x14a   : > { %2593 = vmatmul.msk.bf16.gmra.mxu2 %vm213_vm1, %v3503_v42  ;;  %v3509_v20 = vadd.f32 %v1248_v54, %v1099_v8  ;;  %v928_v8 = vld [vmem:[#allocation2 + $0x138] sm:$0xff] }
 0x14b   : > { %v622_v19 = vpop.f32.mrf.mxu1 }
 0x14c   : > { %3864 = vst [vmem:[#allocation20_spill] sm:$0xff] %v3509_v20  ;;  %2610 = vmatmul.msk.bf16.gmra.mxu3 %vm213_vm1, %v3505_v4  ;;  %v3519_v20 = vpack.c.bf16 %v707_v53, %v706_v61 }
 0x14d   : > { %v807_v38 = vpop.f32.mrf.mxu2 }
 0x14e   : > { %v878_v10 = vadd.f32 %v807_v38, %v618_v32  ;;  %2577 = vmatmul.msk.bf16.gmra.mxu1 %vm213_vm1, %v3505_v4 }
 0x14f   : > { %v1029_v21 = vpop.f32.mrf.mxu3 }
 0x150   : > { %v1100_v35 = vadd.f32 %v1029_v21, %v878_v10  ;;  %v3521_v10 = vpack.c.bf16 %v929_v12, %v928_v8  ;;  %v211_v12 = vld [vmem:[%s3038_s30 + $0xf0] sm:$0xff] }
 0x151   : > { %v1256_v9 = vpop.f32.mrf.mxu0  ;;  %300 = vst.msk [vmem:[#allocation2 + $0x181] sm:$0xff] %vm213_vm1, %v211_v12 }
 0x152   : > { %v3515_v24 = vadd.f32 %v1251_v34, %v1100_v35 }
 0x153   : > { %v624_v30 = vpop.f32.mrf.mxu1 }
 0x154   : > { %3865 = vst [vmem:[#allocation21_spill] sm:$0xff] %v3515_v24  ;;  %2628 = vmatmul.msk.bf16.gmra.mxu0 %vm213_vm1, %v3236_v2  ;;  %v623_v2 = vadd.f32 %v622_v19, %v3327_v0  ;;  %v625_v19 = vadd.f32 %v624_v30, %v3339_v7 }
 0x155   : > { %v809_v54 = vpop.f32.mrf.mxu2 }
 0x156   : > { %v879_v48 = vadd.f32 %v809_v54, %v620_v25 }
 0x157   : > { %v1031_v32 = vpop.f32.mrf.mxu3 }
 0x158   : > { %v1101_v38 = vadd.f32 %v1031_v32, %v879_v48  ;;  %v212_v48 = vld [vmem:[%s3038_s30 + $0xf8] sm:$0xff]  ;;  %s2544_s30 = sshll.u32 %s3705_s29, 7 }
 0x159   : > { %v1258_v34 = vpop.f32.mrf.mxu0  ;;  %v708_v32 = vld [vmem:[#allocation2 + $0x13a] sm:$0xff]  ;;  %301 = vst.msk [vmem:[#allocation2 + $0x189] sm:$0xff] %vm213_vm1, %v212_v48  ;;  %s3712_s4 = scalar_lea.vmem [#allocation3], %s2544_s30 }
 0x15a   : > { %2594 = vmatmul.msk.bf16.gmra.mxu2 %vm213_vm1, %v3519_v20  ;;  %v3525_v21 = vadd.f32 %v1253_v60, %v1101_v38  ;;  %v709_v38 = vld [vmem:[#allocation2 + $0x142] sm:$0xff]  ;;  %s2428_s9 = sshll.u32 %s3712_s4, 4  ;;  %s2429_s9 = int_to_ptr.vmem [resolvable:$true] %s2428_s9 }
 0x15b   : > { %v627_v35 = vpop.f32.mrf.mxu1 }
 0x15c   : > { %3866 = vst [vmem:[#allocation22_spill] sm:$0xff] %v3525_v21  ;;  %2611 = vmatmul.msk.bf16.gmra.mxu3 %vm213_vm1, %v3521_v10  ;;  %v3541_v21 = vpack.c.bf16 %v709_v38, %v708_v32  ;;  %v628_v30 = vadd.f32 %v627_v35, %v3351_v17  ;;  %v932_v35 = vld [vmem:[#allocation2 + $0x168] sm:$0xff] }
 0x15d   : > { %v812_v25 = vpop.f32.mrf.mxu2 }
 0x15e   : > { %v880_v61 = vadd.f32 %v812_v25, %v623_v2  ;;  %2578 = vmatmul.msk.bf16.gmra.mxu1 %vm213_vm1, %v3521_v10  ;;  %v930_v25 = vld [vmem:[#allocation2 + $0x150] sm:$0xff] }
 0x15f   : > { %v1034_v53 = vpop.f32.mrf.mxu3 }
 0x160   : > { %v1102_v54 = vadd.f32 %v1034_v53, %v880_v61  ;;  %v931_v61 = vld [vmem:[#allocation2 + $0x158] sm:$0xff] }
 0x161   : > { %v1261_v8 = vpop.f32.mrf.mxu0 }
 0x162   : > { %v3535_v60 = vadd.f32 %v1256_v9, %v1102_v54  ;;  %v3543_v9 = vpack.c.bf16 %v931_v61, %v930_v25  ;;  %v710_v25 = vld [vmem:[#allocation2 + $0x152] sm:$0xff]  ;;  %v711_v61 = vld [vmem:[#allocation2 + $0x15a] sm:$0xff] }
 0x163   : > { %v629_v0 = vpop.f32.mrf.mxu1 }
 0x164   : > { %3867 = vst [vmem:[#allocation23_spill] sm:$0xff] %v3535_v60  ;;  %2629 = vmatmul.msk.bf16.gmra.mxu0 %vm213_vm1, %v3255_v15 }
 0x165   : > { %v814_v2 = vpop.f32.mrf.mxu2  ;;  %3868 = vst [vmem:[#allocation24_spill] sm:$0xff] %v3543_v9 }
 0x166   : > { %v881_v53 = vadd.f32 %v814_v2, %v625_v19 }
 0x167   : > { %v1036_v24 = vpop.f32.mrf.mxu3 }
 0x168   : > { %v1103_v12 = vadd.f32 %v1036_v24, %v881_v53  ;;  %v630_v53 = vadd.f32 %v629_v0, %v3363_v22  ;;  %v1156_v0 = vld [vmem:[#allocation2 + $0x181] sm:$0xff] }
 0x169   : > { %v1263_v54 = vpop.f32.mrf.mxu0 }
 0x16a   : > { %2595 = vmatmul.msk.bf16.gmra.mxu2 %vm213_vm1, %v3541_v21  ;;  %v3547_v48 = vadd.f32 %v1258_v34, %v1103_v12  ;;  %v933_v12 = vld [vmem:[#allocation2 + $0x170] sm:$0xff] }
 0x16b   : > { %v632_v7 = vpop.f32.mrf.mxu1 }
 0x16c   : > { %3869 = vst [vmem:[#allocation25_spill] sm:$0xff] %v3547_v48  ;;  %2612 = vmatmul.msk.bf16.gmra.mxu3 %vm213_vm1, %v3543_v9  ;;  %v633_v22 = vadd.f32 %v632_v7, %v3379_v31  ;;  %v934_v7 = vld [vmem:[#allocation2 + $0x180] sm:$0xff] }
 0x16d   : > { %v817_v15 = vpop.f32.mrf.mxu2 }
 0x16e   : > { %v882_v19 = vadd.f32 %v817_v15, %v628_v30  ;;  %2579 = vmatmul.msk.bf16.gmra.mxu1 %vm213_vm1, %v3543_v9  ;;  %v3559_v15 = vpack.c.bf16 %v711_v61, %v710_v25 }
 0x16f   : > { %v1039_v24 = vpop.f32.mrf.mxu3 }
 0x170   : > { %v1104_v32 = vadd.f32 %v1039_v24, %v882_v19  ;;  %v950_v19 = vpack.c.bf16 %v933_v12, %v932_v35  ;;  %v712_v12 = vld [vmem:[#allocation2 + $0x16a] sm:$0xff] }
 0x171   : > { %v1266_v38 = vpop.f32.mrf.mxu0 }
 0x172   : > { %v3554_v2 = vadd.f32 %v1261_v8, %v1104_v32 }
 0x173   : > { %v634_v34 = vpop.f32.mrf.mxu1 }
 0x174   : > { %3870 = vst [vmem:[#allocation26_spill] sm:$0xff] %v3554_v2  ;;  %2630 = vmatmul.msk.bf16.gmra.mxu0 %vm213_vm1, %v3287_v36  ;;  %v1157_v2 = vld [vmem:[#allocation2 + $0x189] sm:$0xff] }
 0x175   : > { %v819_v17 = vpop.f32.mrf.mxu2  ;;  %v1173_v61 = vpack.c.bf16 %v1157_v2, %v1156_v0 }
 0x176   : > { %v883_v30 = vadd.f32 %v819_v17, %v630_v53 }
 0x177   : > { %v1041_v48 = vpop.f32.mrf.mxu3 }
 0x178   : > { %v1105_v60 = vadd.f32 %v1041_v48, %v883_v30  ;;  %v635_v30 = vadd.f32 %v634_v34, %v3391_v40 }
 0x179   : > { %v1268_v24 = vpop.f32.mrf.mxu0 }
 0x17a   : > { %2596 = vmatmul.msk.bf16.gmra.mxu2 %vm213_vm1, %v3559_v15  ;;  %v3563_v8 = vadd.f32 %v1263_v54, %v1105_v60  ;;  %v713_v60 = vld [vmem:[#allocation2 + $0x172] sm:$0xff] }
 0x17b   : > { %v637_v32 = vpop.f32.mrf.mxu1 }
 0x17c   : > { %3871 = vst [vmem:[#allocation27_spill] sm:$0xff] %v3563_v8  ;;  %2613 = vmatmul.msk.bf16.gmra.mxu3 %vm213_vm1, %v950_v19  ;;  %v935_v8 = vld [vmem:[#allocation2 + $0x188] sm:$0xff]  ;;  %v638_v40 = vadd.f32 %v637_v32, %v3407_v49 }
 0x17d   : > { %v822_v36 = vpop.f32.mrf.mxu2 }
 0x17e   : > { %v884_v53 = vadd.f32 %v822_v36, %v633_v22  ;;  %2580 = vmatmul.msk.bf16.gmra.mxu1 %vm213_vm1, %v950_v19  ;;  %v3572_v22 = vpack.c.bf16 %v713_v60, %v712_v12 }
 0x17f   : > { %v1044_v25 = vpop.f32.mrf.mxu3 }
 0x180   : > { %v1106_v48 = vadd.f32 %v1044_v25, %v884_v53  ;;  %v951_v53 = vpack.c.bf16 %v935_v8, %v934_v7 }
 0x181   : > { %v1271_v17 = vpop.f32.mrf.mxu0 }
 0x182   : > { %v3568_v35 = vadd.f32 %v1266_v38, %v1106_v48 }
 0x183   : > { %v639_v54 = vpop.f32.mrf.mxu1 }
 0x184   : > { %2631 = vmatmul.msk.bf16.gmra.mxu0 %vm213_vm1, %v1173_v61  ;;  %v640_v60 = vadd.f32 %v639_v54, %v3419_v58 }
 0x185   : > { %v824_v31 = vpop.f32.mrf.mxu2 }
 0x186   : > { %v885_v9 = vadd.f32 %v824_v31, %v635_v30 }
 0x187   : > { %v1046_v19 = vpop.f32.mrf.mxu3 }
 0x188   : > { %v1107_v36 = vadd.f32 %v1046_v19, %v885_v9 }
 0x189   : > { %v1273_v2 = vpop.f32.mrf.mxu0 }
 0x18a   : > { %2597 = vmatmul.msk.bf16.gmra.mxu2 %vm213_vm1, %v3572_v22  ;;  %v3576_v38 = vadd.f32 %v1268_v24, %v1107_v36 }
 0x18b   : > { %v642_v0 = vpop.f32.mrf.mxu1 }
 0x18c   : > { %2614 = vmatmul.msk.bf16.gmra.mxu3 %vm213_vm1, %v951_v53 }
 0x18d   : > { %v827_v34 = vpop.f32.mrf.mxu2 }
 0x18e   : > { %v886_v25 = vadd.f32 %v827_v34, %v638_v40  ;;  %2633 = vmatmul.msk.bf16.vlgmr.msra.gmra.mxu1 %vm213_vm1, %v3301_v50 }
 0x18f   : > { %v1049_v48 = vpop.f32.mrf.mxu3 }
 0x190   : > { %v1108_v61 = vadd.f32 %v1049_v48, %v886_v25 }
 0x191   : > { %v1276_v9 = vpop.f32.mrf.mxu0 }
 0x192   : > { %v3582_v8 = vadd.f32 %v1271_v17, %v1108_v61  ;;  %v643_v17 = vadd.f32 %v642_v0, %v3355_v18 }
 0x193   : > { %v644_v12 = vpop.f32.mrf.mxu1 }
 0x194   : > { %2684 = vmatmul.msk.bf16.vlgmr.msra.gmra.mxu0 %vm213_vm1, %v3313_v56 }
 0x195   : > { %v829_v24 = vpop.f32.mrf.mxu2 }
 0x196   : > { %v887_v49 = vadd.f32 %v829_v24, %v640_v60 }
 0x197   : > { %v1051_v32 = vpop.f32.mrf.mxu3 }
 0x198   : > { %v1109_v30 = vadd.f32 %v1051_v32, %v887_v49 }
 0x199   : > { %v1278_v31 = vpop.f32.mrf.mxu0 }
 0x19a   : > { %2650 = vmatmul.msk.bf16.vlgmr.msra.gmra.mxu2 %vm213_vm1, %v3303_v51  ;;  %v3589_v50 = vadd.f32 %v1273_v2, %v1109_v30  ;;  %v645_v51 = vadd.f32 %v644_v12, %v3367_v23  ;;  %v1797_v30 = vld [vmem:[#allocation2 + $0x61] sm:$0xff] }
 0x19b   : > { %v647_v7 = vpop.f32.mrf.mxu1 }
 0x19c   : > { %2667 = vmatmul.msk.bf16.vlgmr.msra.gmra.mxu3 %vm213_vm1, %v3249_v6  ;;  %v648_v61 = vadd.f32 %v647_v7, %v3383_v3 }
 0x19d   : > { %v832_v58 = vpop.f32.mrf.mxu2 }
 0x19e   : > { %v888_v54 = vadd.f32 %v832_v58, %v643_v17  ;;  %2634 = vmatmul.msk.bf16.gmra.mxu1 %vm213_vm1, %v3313_v56 }
 0x19f   : > { %v1054_v19 = vpop.f32.mrf.mxu3 }
 0x1a0   : > { %v1110_v36 = vadd.f32 %v1054_v19, %v888_v54 }
 0x1a1   : > { %v1281_v53 = vpop.f32.mrf.mxu0 }
 0x1a2   : > { %v3596_v40 = vadd.f32 %v1276_v9, %v1110_v36 }
 0x1a3   : > { %v649_v34 = vpop.f32.mrf.mxu1 }
 0x1a4   : > { %2685 = vmatmul.msk.bf16.gmra.mxu0 %vm213_vm1, %v3325_v63 }
 0x1a5   : > { %v834_v18 = vpop.f32.mrf.mxu2 }
 0x1a6   : > { %v889_v2 = vadd.f32 %v834_v18, %v645_v51 }
 0x1a7   : > { %v1056_v0 = vpop.f32.mrf.mxu3 }
 0x1a8   : > { %v1111_v6 = vadd.f32 %v1056_v0, %v889_v2 }
 0x1a9   : > { %v1283_v25 = vpop.f32.mrf.mxu0 }
 0x1aa   : > { %2651 = vmatmul.msk.bf16.gmra.mxu2 %vm213_vm1, %v3315_v57  ;;  %v3603_v56 = vadd.f32 %v1278_v31, %v1111_v6  ;;  %v650_v57 = vadd.f32 %v649_v34, %v3395_v41  ;;  %v1798_v31 = vld [vmem:[#allocation2 + $0x69] sm:$0xff] }
 0x1ab   : > { %v652_v48 = vpop.f32.mrf.mxu1  ;;  %v1827_v58 = vpack.c.bf16 %v1798_v31, %v1797_v30 }
 0x1ac   : > { %2668 = vmatmul.msk.bf16.gmra.mxu3 %vm213_vm1, %v3281_v27  ;;  %v653_v36 = vadd.f32 %v652_v48, %v3411_v16  ;;  %v1799_v16 = vld [vmem:[#allocation2 + $0x79] sm:$0xff] }
 0x1ad   : > { %v837_v23 = vpop.f32.mrf.mxu2 }
 0x1ae   : > { %v890_v9 = vadd.f32 %v837_v23, %v648_v61  ;;  %2635 = vmatmul.msk.bf16.gmra.mxu1 %vm213_vm1, %v3325_v63 }
 0x1af   : > { %v1059_v12 = vpop.f32.mrf.mxu3 }
 0x1b0   : > { %v1112_v60 = vadd.f32 %v1059_v12, %v890_v9 }
 0x1b1   : > { %v1286_v24 = vpop.f32.mrf.mxu0 }
 0x1b2   : > { %v3610_v49 = vadd.f32 %v1281_v53, %v1112_v60 }
 0x1b3   : > { %v654_v32 = vpop.f32.mrf.mxu1 }
 0x1b4   : > { %2686 = vmatmul.msk.bf16.gmra.mxu0 %vm213_vm1, %v3343_v11 }
 0x1b5   : > { %v839_v3 = vpop.f32.mrf.mxu2 }
 0x1b6   : > { %v891_v27 = vadd.f32 %v839_v3, %v650_v57 }
 0x1b7   : > { %v1061_v7 = vpop.f32.mrf.mxu3 }
 0x1b8   : > { %v1113_v17 = vadd.f32 %v1061_v7, %v891_v27 }
 0x1b9   : > { %v1288_v54 = vpop.f32.mrf.mxu0 }
 0x1ba   : > { %2652 = vmatmul.msk.bf16.gmra.mxu2 %vm213_vm1, %v3329_v1  ;;  %v3617_v63 = vadd.f32 %v1283_v25, %v1113_v17  ;;  %v655_v1 = vadd.f32 %v654_v32, %v3423_v59  ;;  %v1800_v25 = vld [vmem:[#allocation2 + $0x81] sm:$0xff]  ;;  %v1802_v17 = vld [vmem:[#allocation2 + $0x99] sm:$0xff] }
 0x1bb   : > { %v657_v19 = vpop.f32.mrf.mxu1  ;;  %v1828_v9 = vpack.c.bf16 %v1800_v25, %v1799_v16 }
 0x1bc   : > { %2669 = vmatmul.msk.bf16.gmra.mxu3 %vm213_vm1, %v1827_v58 }
 0x1bd   : > { %v842_v41 = vpop.f32.mrf.mxu2 }
 0x1be   : > { %v892_v53 = vadd.f32 %v842_v41, %v653_v36  ;;  %2636 = vmatmul.msk.bf16.gmra.mxu1 %vm213_vm1, %v3343_v11 }
 0x1bf   : > { %v1064_v34 = vpop.f32.mrf.mxu3 }
 0x1c0   : > { %v1114_v51 = vadd.f32 %v1064_v34, %v892_v53 }
 0x1c1   : > { %v1291_v18 = vpop.f32.mrf.mxu0 }
 0x1c2   : > { %v3623_v2 = vadd.f32 %v1286_v24, %v1114_v51  ;;  %v658_v24 = vadd.f32 %v657_v19, %v3437_v33  ;;  %v1801_v33 = vld [vmem:[#allocation2 + $0x91] sm:$0xff] }
 0x1c3   : > { %v659_v0 = vpop.f32.mrf.mxu1  ;;  %v1829_v36 = vpack.c.bf16 %v1802_v17, %v1801_v33  ;;  %v3873_v33 = vld [vmem:[#allocation10_spill] sm:$0xff]  ;;  %v3874_v17 = vld [vmem:[#allocation15_spill] sm:$0xff] }
 0x1c4   : > { %2687 = vmatmul.msk.bf16.gmra.mxu0 %vm213_vm1, %v3369_v26 }
 0x1c5   : > { %v844_v6 = vpop.f32.mrf.mxu2 }
 0x1c6   : > { %v893_v48 = vadd.f32 %v844_v6, %v655_v1 }
 0x1c7   : > { %v1066_v61 = vpop.f32.mrf.mxu3 }
 0x1c8   : > { %v1115_v23 = vadd.f32 %v1066_v61, %v893_v48  ;;  %v1804_v48 = vld [vmem:[#allocation2 + $0xb1] sm:$0xff] }
 0x1c9   : > { %v1293_v12 = vpop.f32.mrf.mxu0 }
 0x1ca   : > { %2653 = vmatmul.msk.bf16.gmra.mxu2 %vm213_vm1, %v3347_v14  ;;  %v3630_v11 = vadd.f32 %v1288_v54, %v1115_v23  ;;  %v660_v14 = vadd.f32 %v659_v0, %v3446_v44 }
 0x1cb   : > { %v662_v60 = vpop.f32.mrf.mxu1 }
 0x1cc   : > { %2670 = vmatmul.msk.bf16.gmra.mxu3 %vm213_vm1, %v1828_v9  ;;  %v663_v34 = vadd.f32 %v662_v60, %v3359_v43  ;;  %v1803_v43 = vld [vmem:[#allocation2 + $0xa9] sm:$0xff] }
 0x1cd   : > { %v847_v59 = vpop.f32.mrf.mxu2 }
 0x1ce   : > { %v894_v32 = vadd.f32 %v847_v59, %v658_v24  ;;  %2637 = vmatmul.msk.bf16.gmra.mxu1 %vm213_vm1, %v3369_v26  ;;  %v3872_v59 = vld [vmem:[#allocation9_spill] sm:$0xff] }
 0x1cf   : > { %v1069_v57 = vpop.f32.mrf.mxu3 }
 0x1d0   : > { %v1116_v3 = vadd.f32 %v1069_v57, %v894_v32 }
 0x1d1   : > { %v1296_v30 = vpop.f32.mrf.mxu0 }
 0x1d2   : > { %v3636_v31 = vadd.f32 %v1291_v18, %v1116_v3 }
 0x1d3   : > { %v664_v27 = vpop.f32.mrf.mxu1 }
 0x1d4   : > { %2688 = vmatmul.msk.bf16.gmra.mxu0 %vm213_vm1, %v3397_v45 }
 0x1d5   : > { %v849_v7 = vpop.f32.mrf.mxu2 }
 0x1d6   : > { %v895_v58 = vadd.f32 %v849_v7, %v660_v14 }
 0x1d7   : > { %v1071_v54 = vpop.f32.mrf.mxu3 }
 0x1d8   : > { %v1117_v19 = vadd.f32 %v1071_v54, %v895_v58  ;;  %v1805_v54 = vld [vmem:[#allocation2 + $0xc1] sm:$0xff] }
 0x1d9   : > { %v1298_v41 = vpop.f32.mrf.mxu0 }
 0x1da   : > { %2654 = vmatmul.msk.bf16.gmra.mxu2 %vm213_vm1, %v3373_v29  ;;  %v3643_v26 = vadd.f32 %v1293_v12, %v1117_v19  ;;  %v665_v29 = vadd.f32 %v664_v27, %v3371_v28  ;;  %v1830_v12 = vpack.c.bf16 %v1804_v48, %v1803_v43  ;;  %v1806_v19 = vld [vmem:[#allocation2 + $0xc9] sm:$0xff] }
 0x1db   : > { %v667_v53 = vpop.f32.mrf.mxu1 }
 0x1dc   : > { %2671 = vmatmul.msk.bf16.gmra.mxu3 %vm213_vm1, %v1829_v36  ;;  %v668_v32 = vadd.f32 %v667_v53, %v3872_v59  ;;  %v1808_v59 = vld [vmem:[#allocation2 + $0xe1] sm:$0xff] }
 0x1dd   : > { %v852_v44 = vpop.f32.mrf.mxu2 }
 0x1de   : > { %v896_v51 = vadd.f32 %v852_v44, %v663_v34  ;;  %2638 = vmatmul.msk.bf16.gmra.mxu1 %vm213_vm1, %v3397_v45  ;;  %v1831_v34 = vpack.c.bf16 %v1806_v19, %v1805_v54 }
 0x1df   : > { %v1074_v18 = vpop.f32.mrf.mxu3 }
 0x1e0   : > { %v1118_v0 = vadd.f32 %v1074_v18, %v896_v51 }
 0x1e1   : > { %v1301_v1 = vpop.f32.mrf.mxu0 }
 0x1e2   : > { %v3649_v6 = vadd.f32 %v1296_v30, %v1118_v0  ;;  %v3876_v0 = vld [vmem:[#allocation11_spill] sm:$0xff] }
 0x1e3   : > { %v669_v16 = vpop.f32.mrf.mxu1 }
 0x1e4   : > { %2689 = vmatmul.msk.bf16.gmra.mxu0 %vm213_vm1, %v3425_v5 }
 0x1e5   : > { %v854_v25 = vpop.f32.mrf.mxu2 }
 0x1e6   : > { %v897_v61 = vadd.f32 %v854_v25, %v665_v29 }
 0x1e7   : > { %v1076_v23 = vpop.f32.mrf.mxu3 }
 0x1e8   : > { %v1119_v9 = vadd.f32 %v1076_v23, %v897_v61 }
 0x1e9   : > { %v1303_v60 = vpop.f32.mrf.mxu0 }
 0x1ea   : > { %2655 = vmatmul.msk.bf16.gmra.mxu2 %vm213_vm1, %v3401_v47  ;;  %v3656_v45 = vadd.f32 %v1298_v41, %v1119_v9  ;;  %v670_v47 = vadd.f32 %v669_v16, %v3873_v33  ;;  %v3877_v9 = vld [vmem:[#allocation12_spill] sm:$0xff]  ;;  %v3878_v33 = vld [vmem:[#allocation17_spill] sm:$0xff] }
 0x1eb   : > { %v672_v24 = vpop.f32.mrf.mxu1 }
 0x1ec   : > { %2672 = vmatmul.msk.bf16.gmra.mxu3 %vm213_vm1, %v1830_v12 }
 0x1ed   : > { %v857_v28 = vpop.f32.mrf.mxu2 }
 0x1ee   : > { %v898_v57 = vadd.f32 %v857_v28, %v668_v32  ;;  %2639 = vmatmul.msk.bf16.gmra.mxu1 %vm213_vm1, %v3425_v5  ;;  %v3875_v5 = vld [vmem:[#allocation13_spill] sm:$0xff] }
 0x1ef   : > { %v1079_v3 = vpop.f32.mrf.mxu3 }
 0x1f0   : > { %v1120_v30 = vadd.f32 %v1079_v3, %v898_v57 }
 0x1f1   : > { %v1306_v27 = vpop.f32.mrf.mxu0 }
 0x1f2   : > { %v3662_v14 = vadd.f32 %v1301_v1, %v1120_v30  ;;  %v673_v1 = vadd.f32 %v672_v24, %v3876_v0  ;;  %v1807_v24 = vld [vmem:[#allocation2 + $0xd9] sm:$0xff] }
 0x1f3   : > { %v674_v7 = vpop.f32.mrf.mxu1  ;;  %v1832_v3 = vpack.c.bf16 %v1808_v59, %v1807_v24 }
 0x1f4   : > { %2690 = vmatmul.msk.bf16.gmra.mxu0 %vm213_vm1, %v3874_v17  ;;  %v675_v12 = vadd.f32 %v674_v7, %v3877_v9 }
 0x1f5   : > { %v859_v58 = vpop.f32.mrf.mxu2 }
 0x1f6   : > { %v899_v36 = vadd.f32 %v859_v58, %v670_v47 }
 0x1f7   : > { %v1081_v41 = vpop.f32.mrf.mxu3 }
 0x1f8   : > { %v1121_v53 = vadd.f32 %v1081_v41, %v899_v36 }
 0x1f9   : > { %v1308_v44 = vpop.f32.mrf.mxu0 }
 0x1fa   : > { %2656 = vmatmul.msk.bf16.gmra.mxu2 %vm213_vm1, %v3875_v5  ;;  %v3669_v51 = vadd.f32 %v1303_v60, %v1121_v53  ;;  %v3880_v5 = vld [vmem:[#allocation16_spill] sm:$0xff] }
 0x1fb   : > { %v677_v18 = vpop.f32.mrf.mxu1 }
 0x1fc   : > { %2673 = vmatmul.msk.bf16.gmra.mxu3 %vm213_vm1, %v1831_v34 }
 0x1fd   : > { %v862_v16 = vpop.f32.mrf.mxu2 }
 0x1fe   : > { %v900_v29 = vadd.f32 %v862_v16, %v673_v1  ;;  %2640 = vmatmul.msk.bf16.gmra.mxu1 %vm213_vm1, %v3874_v17  ;;  %v3879_v17 = vld [vmem:[#allocation14_spill] sm:$0xff] }
 0x1ff   : > { %v1084_v25 = vpop.f32.mrf.mxu3  ;;  %v678_v58 = vadd.f32 %v677_v18, %v3879_v17  ;;  %v1809_v18 = vld [vmem:[#allocation2 + $0xf1] sm:$0xff]  ;;  %v1810_v1 = vld [vmem:[#allocation2 + $0xf9] sm:$0xff] }
 0x200   : > { %v1122_v43 = vadd.f32 %v1084_v25, %v900_v29 }
 0x201   : > { %v1311_v48 = vpop.f32.mrf.mxu0 }
 0x202   : > { %v3675_v61 = vadd.f32 %v1306_v27, %v1122_v43  ;;  %v1833_v43 = vpack.c.bf16 %v1810_v1, %v1809_v18 }
 0x203   : > { %v679_v23 = vpop.f32.mrf.mxu1 }
 0x204   : > { %2691 = vmatmul.msk.bf16.gmra.mxu0 %vm213_vm1, %v3467_v13  ;;  %v680_v0 = vadd.f32 %v679_v23, %v3880_v5 }
 0x205   : > { %v864_v60 = vpop.f32.mrf.mxu2 }
 0x206   : > { %v901_v32 = vadd.f32 %v864_v60, %v675_v12 }
 0x207   : > { %v1086_v28 = vpop.f32.mrf.mxu3 }
 0x208   : > { %v1123_v57 = vadd.f32 %v1086_v28, %v901_v32 }
 0x209   : > { %v1313_v30 = vpop.f32.mrf.mxu0 }
 0x20a   : > { %2657 = vmatmul.msk.bf16.gmra.mxu2 %vm213_vm1, %v3878_v33  ;;  %v3682_v47 = vadd.f32 %v1308_v44, %v1123_v57  ;;  %v3881_v57 = vld [vmem:[#allocation18_spill] sm:$0xff]  ;;  %v1812_v33 = vld [vmem:[#allocation2 + $0x111] sm:$0xff] }
 0x20b   : > { %v1458_v27 = vpop.f32.mrf.mxu1 }
 0x20c   : > { %2674 = vmatmul.msk.bf16.gmra.mxu3 %vm213_vm1, %v1832_v3  ;;  %v1538_v12 = vadd.f32 %v1458_v27, %v3462_v55 }
 0x20d   : > { %v867_v7 = vpop.f32.mrf.mxu2 }
 0x20e   : > { %v902_v54 = vadd.f32 %v867_v7, %v678_v58  ;;  %2641 = vmatmul.msk.bf16.gmra.mxu1 %vm213_vm1, %v3467_v13 }
 0x20f   : > { %v1089_v19 = vpop.f32.mrf.mxu3 }
 0x210   : > { %v1124_v36 = vadd.f32 %v1089_v19, %v902_v54 }
 0x211   : > { %v2125_v41 = vpop.f32.mrf.mxu0 }
 0x212   : > { %v3688_v53 = vadd.f32 %v1311_v48, %v1124_v36 }
 0x213   : > { %v1460_v34 = vpop.f32.mrf.mxu1 }
 0x214   : > { %2692 = vmatmul.msk.bf16.gmra.mxu0 %vm213_vm1, %v3485_v37  ;;  %v1539_v3 = vadd.f32 %v1460_v34, %v3881_v57 }
 0x215   : > { %v869_v44 = vpop.f32.mrf.mxu2 }
 0x216   : > { %v903_v16 = vadd.f32 %v869_v44, %v680_v0 }
 0x217   : > { %v1091_v29 = vpop.f32.mrf.mxu3 }
 0x218   : > { %v1125_v25 = vadd.f32 %v1091_v29, %v903_v16 }
 0x219   : > { %v2127_v9 = vpop.f32.mrf.mxu0 }
 0x21a   : > { %2658 = vmatmul.msk.bf16.gmra.mxu2 %vm213_vm1, %v3469_v39  ;;  %v3695_v13 = vadd.f32 %v1313_v30, %v1125_v25  ;;  %v1811_v30 = vld [vmem:[#allocation2 + $0x109] sm:$0xff] }
 0x21b   : > { %v1463_v48 = vpop.f32.mrf.mxu1  ;;  %v1834_v58 = vpack.c.bf16 %v1812_v33, %v1811_v30 }
 0x21c   : > { %2675 = vmatmul.msk.bf16.gmra.mxu3 %vm213_vm1, %v1833_v43  ;;  %v1540_v19 = vadd.f32 %v1463_v48, %v3480_v62  ;;  %v3882_v48 = vld [vmem:[#allocation19_spill] sm:$0xff] }
 0x21d   : > { %v1681_v23 = vpop.f32.mrf.mxu2 }
 0x21e   : > { %2642 = vmatmul.msk.bf16.gmra.mxu1 %vm213_vm1, %v3485_v37  ;;  %v1761_v24 = vadd.f32 %v1681_v23, %v1538_v12 }
 0x21f   : > { %v1903_v60 = vpop.f32.mrf.mxu3 }
 0x220   : > { %v1983_v28 = vadd.f32 %v1903_v60, %v1761_v24  ;;  %v1813_v60 = vld [vmem:[#allocation2 + $0x121] sm:$0xff]  ;;  %v1814_v24 = vld [vmem:[#allocation2 + $0x129] sm:$0xff] }
 0x221   : > { %v2130_v59 = vpop.f32.mrf.mxu0 }
 0x222   : > { %v2205_v17 = vadd.f32 %v2125_v41, %v1983_v28 }
 0x223   : > { %v1465_v32 = vpop.f32.mrf.mxu1 }
 0x224   : > { %2693 = vmatmul.msk.bf16.gmra.mxu0 %vm213_vm1, %v3503_v42  ;;  %v2338_v34 = vmul.f32 %v2205_v17, %v2205_v17  ;;  %v1541_v23 = vadd.f32 %v1465_v32, %v3882_v48 }
 0x225   : > { %v1683_v39 = vpop.f32.mrf.mxu2 }
 0x226   : > { %v1762_v55 = vadd.f32 %v1683_v39, %v1539_v3  ;;  %v1835_v39 = vpack.c.bf16 %v1814_v24, %v1813_v60  ;;  %v3884_v60 = vld [vmem:[#allocation21_spill] sm:$0xff] }
 0x227   : > { %v1905_v27 = vpop.f32.mrf.mxu3 }
 0x228   : > { %v1984_v37 = vadd.f32 %v1905_v27, %v1762_v55 }
 0x229   : > { %v2132_v7 = vpop.f32.mrf.mxu0 }
 0x22a   : > { %v2206_v54 = vadd.f32 %v2127_v9, %v1984_v37  ;;  %2659 = vmatmul.msk.bf16.gmra.mxu2 %vm213_vm1, %v3487_v46 }
 0x22b   : > { %v1468_v36 = vpop.f32.mrf.mxu1 }
 0x22c   : > { %v2712_v5 = vpack.c.bf16 %v2206_v54, %v2205_v17  ;;  %v2301_v0 = vadd.f32 %v2206_v54, %v2205_v17  ;;  %v2339_v44 = vmul.f32 %v2206_v54, %v2206_v54  ;;  %2676 = vmatmul.msk.bf16.gmra.mxu3 %vm213_vm1, %v1834_v58  ;;  %v1542_v17 = vadd.f32 %v1468_v36, %v3498_v52  ;;  %v1815_v36 = vld [vmem:[#allocation2 + $0x139] sm:$0xff] }
 0x22d   : > { %v1686_v18 = vpop.f32.mrf.mxu2 }
 0x22e   : > { %2713 = vst [vmem:[%s3712_s4] sm:$0xff] %v2712_v5   ;;  %v2370_v41 = vadd.f32 %v2339_v44, %v2338_v34  ;;  %v1763_v1 = vadd.f32 %v1686_v18, %v1540_v19  ;;  %2643 = vmatmul.msk.bf16.gmra.mxu1 %vm213_vm1, %v3503_v42  ;;  %v3883_v18 = vld [vmem:[#allocation20_spill] sm:$0xff] }
 0x22f   : > { %v1908_v46 = vpop.f32.mrf.mxu3 }
 0x230   : > { %v1985_v16 = vadd.f32 %v1908_v46, %v1763_v1  ;;  %v1816_v1 = vld [vmem:[#allocation2 + $0x141] sm:$0xff] }
 0x231   : > { %v2135_v62 = vpop.f32.mrf.mxu0 }
 0x232   : > { %v2207_v29 = vadd.f32 %v2130_v59, %v1985_v16 }
 0x233   : > { %v1470_v25 = vpop.f32.mrf.mxu1 }
 0x234   : > { %v2302_v43 = vadd.f32 %v2301_v0, %v2207_v29  ;;  %v2340_v9 = vmul.f32 %v2207_v29, %v2207_v29  ;;  %2694 = vmatmul.msk.bf16.gmra.mxu0 %vm213_vm1, %v3519_v20 }
 0x235   : > { %v1688_v12 = vpop.f32.mrf.mxu2 }
 0x236   : > { %v2371_v28 = vadd.f32 %v2370_v41, %v2340_v9  ;;  %v1764_v57 = vadd.f32 %v1688_v12, %v1541_v23  ;;  %v1543_v41 = vadd.f32 %v1470_v25, %v3883_v18 }
 0x237   : > { %v1910_v3 = vpop.f32.mrf.mxu3 }
 0x238   : > { %v1986_v42 = vadd.f32 %v1910_v3, %v1764_v57 }
 0x239   : > { %v2137_v30 = vpop.f32.mrf.mxu0 }
 0x23a   : > { %v2208_v33 = vadd.f32 %v2132_v7, %v1986_v42  ;;  %2660 = vmatmul.msk.bf16.gmra.mxu2 %vm213_vm1, %v3505_v4 }
 0x23b   : > { %v1473_v59 = vpop.f32.mrf.mxu1 }
 0x23c   : > { %v2717_v55 = vpack.c.bf16 %v2208_v33, %v2207_v29  ;;  %v2303_v32 = vadd.f32 %v2302_v43, %v2208_v33  ;;  %v2341_v27 = vmul.f32 %v2208_v33, %v2208_v33  ;;  %2677 = vmatmul.msk.bf16.gmra.mxu3 %vm213_vm1, %v1835_v39  ;;  %v1836_v43 = vpack.c.bf16 %v1816_v1, %v1815_v36 }
 0x23d   : > { %v1691_v37 = vpop.f32.mrf.mxu2  ;;  %v1544_v24 = vadd.f32 %v1473_v59, %v3884_v60  ;;  %v1598_v60 = vld [vmem:[#allocation2 + $0x170] sm:$0xff] }
 0x23e   : > { %2789 = vst [vmem:[%s3712_s4 + $0x8] sm:$0xff] %v2717_v55   ;;  %v2372_v58 = vadd.f32 %v2371_v28, %v2341_v27  ;;  %v1765_v54 = vadd.f32 %v1691_v37, %v1542_v17  ;;  %2644 = vmatmul.msk.bf16.gmra.mxu1 %vm213_vm1, %v3519_v20  ;;  %v3885_v27 = vld [vmem:[#allocation22_spill] sm:$0xff]  ;;  %v1817_v37 = vld [vmem:[#allocation2 + $0x151] sm:$0xff] }
 0x23f   : > { %v1913_v19 = vpop.f32.mrf.mxu3 }
 0x240   : > { %v1987_v7 = vadd.f32 %v1913_v19, %v1765_v54 }
 0x241   : > { %v2140_v34 = vpop.f32.mrf.mxu0 }
 0x242   : > { %v2209_v5 = vadd.f32 %v2135_v62, %v1987_v7 }
 0x243   : > { %v1475_v4 = vpop.f32.mrf.mxu1 }
 0x244   : > { %v2304_v0 = vadd.f32 %v2303_v32, %v2209_v5  ;;  %v2342_v44 = vmul.f32 %v2209_v5, %v2209_v5  ;;  %2695 = vmatmul.msk.bf16.gmra.mxu0 %vm213_vm1, %v3541_v21  ;;  %v1545_v17 = vadd.f32 %v1475_v4, %v3885_v27 }
 0x245   : > { %v1693_v52 = vpop.f32.mrf.mxu2 }
 0x246   : > { %v2373_v46 = vadd.f32 %v2372_v58, %v2342_v44  ;;  %v1766_v16 = vadd.f32 %v1693_v52, %v1543_v41  ;;  %v1818_v58 = vld [vmem:[#allocation2 + $0x159] sm:$0xff]  ;;  %v3886_v41 = vld [vmem:[#allocation24_spill] sm:$0xff] }
 0x247   : > { %v1915_v29 = vpop.f32.mrf.mxu3  ;;  %v1837_v44 = vpack.c.bf16 %v1818_v58, %v1817_v37  ;;  %v1377_v37 = vld [vmem:[#allocation2 + $0x172] sm:$0xff] }
 0x248   : > { %v1988_v20 = vadd.f32 %v1915_v29, %v1766_v16 }
 0x249   : > { %v2142_v9 = vpop.f32.mrf.mxu0 }
 0x24a   : > { %v2210_v48 = vadd.f32 %v2137_v30, %v1988_v20  ;;  %2661 = vmatmul.msk.bf16.gmra.mxu2 %vm213_vm1, %v3521_v10 }
 0x24b   : > { %v1478_v62 = vpop.f32.mrf.mxu1 }
 0x24c   : > { %v2722_v23 = vpack.c.bf16 %v2210_v48, %v2209_v5  ;;  %v2305_v25 = vadd.f32 %v2304_v0, %v2210_v48  ;;  %v2343_v12 = vmul.f32 %v2210_v48, %v2210_v48  ;;  %2678 = vmatmul.msk.bf16.gmra.mxu3 %vm213_vm1, %v1836_v43  ;;  %v1375_v5 = vld [vmem:[#allocation2 + $0x15a] sm:$0xff] }
 0x24d   : > { %v1696_v28 = vpop.f32.mrf.mxu2 }
 0x24e   : > { %2790 = vst [vmem:[%s3712_s4 + $0x10] sm:$0xff] %v2722_v23   ;;  %v2374_v57 = vadd.f32 %v2373_v46, %v2343_v12  ;;  %v1767_v3 = vadd.f32 %v1696_v28, %v1544_v24  ;;  %2645 = vmatmul.msk.bf16.gmra.mxu1 %vm213_vm1, %v3541_v21  ;;  %v1374_v21 = vld [vmem:[#allocation2 + $0x152] sm:$0xff]  ;;  %v3887_v46 = vld [vmem:[#allocation23_spill] sm:$0xff] }
 0x24f   : > { %v1918_v42 = vpop.f32.mrf.mxu3  ;;  %v1393_v4 = vpack.c.bf16 %v1375_v5, %v1374_v21  ;;  %v1546_v16 = vadd.f32 %v1478_v62, %v3887_v46  ;;  %v1597_v12 = vld [vmem:[#allocation2 + $0x168] sm:$0xff] }
 0x250   : > { %v1989_v39 = vadd.f32 %v1918_v42, %v1767_v3  ;;  %v3888_v3 = vld [vmem:[#allocation25_spill] sm:$0xff]  ;;  %v1616_v27 = vpack.c.bf16 %v1598_v60, %v1597_v12 }
 0x251   : > { %v2145_v30 = vpop.f32.mrf.mxu0 }
 0x252   : > { %v2211_v33 = vadd.f32 %v2140_v34, %v1989_v39  ;;  %v1819_v39 = vld [vmem:[#allocation2 + $0x169] sm:$0xff] }
 0x253   : > { %v1480_v10 = vpop.f32.mrf.mxu1 }
 0x254   : > { %v2306_v55 = vadd.f32 %v2305_v25, %v2211_v33  ;;  %v2344_v32 = vmul.f32 %v2211_v33, %v2211_v33  ;;  %2696 = vmatmul.msk.bf16.gmra.mxu0 %vm213_vm1, %v3559_v15  ;;  %v1547_v42 = vadd.f32 %v1480_v10, %v3888_v3 }
 0x255   : > { %v1698_v59 = vpop.f32.mrf.mxu2 }
 0x256   : > { %v2375_v54 = vadd.f32 %v2374_v57, %v2344_v32  ;;  %v1768_v19 = vadd.f32 %v1698_v59, %v1545_v17  ;;  %v1376_v59 = vld [vmem:[#allocation2 + $0x16a] sm:$0xff] }
 0x257   : > { %v1920_v7 = vpop.f32.mrf.mxu3  ;;  %v1394_v10 = vpack.c.bf16 %v1377_v37, %v1376_v59 }
 0x258   : > { %v1990_v0 = vadd.f32 %v1920_v7, %v1768_v19 }
 0x259   : > { %v2147_v34 = vpop.f32.mrf.mxu0 }
 0x25a   : > { %v2212_v18 = vadd.f32 %v2142_v9, %v1990_v0  ;;  %2662 = vmatmul.msk.bf16.gmra.mxu2 %vm213_vm1, %v3886_v41  ;;  %v3889_v0 = vld [vmem:[#allocation26_spill] sm:$0xff] }
 0x25b   : > { %v1483_v52 = vpop.f32.mrf.mxu1  ;;  %v2043_v41 = vld [vmem:[#allocation2 + $0x182] sm:$0xff] }
 0x25c   : > { %v2727_v36 = vpack.c.bf16 %v2212_v18, %v2211_v33  ;;  %v2307_v15 = vadd.f32 %v2306_v55, %v2212_v18  ;;  %v2345_v1 = vmul.f32 %v2212_v18, %v2212_v18  ;;  %2679 = vmatmul.msk.bf16.gmra.mxu3 %vm213_vm1, %v1837_v44  ;;  %v1820_v33 = vld [vmem:[#allocation2 + $0x171] sm:$0xff]  ;;  %v1548_v44 = vadd.f32 %v1483_v52, %v3889_v0 }
 0x25d   : > { %v1701_v29 = vpop.f32.mrf.mxu2  ;;  %v1838_v58 = vpack.c.bf16 %v1820_v33, %v1819_v39 }
 0x25e   : > { %2791 = vst [vmem:[%s3712_s4 + $0x18] sm:$0xff] %v2727_v36   ;;  %v2376_v20 = vadd.f32 %v2375_v54, %v2345_v1  ;;  %v1769_v43 = vadd.f32 %v1701_v29, %v1546_v16  ;;  %2646 = vmatmul.msk.bf16.gmra.mxu1 %vm213_vm1, %v1393_v4  ;;  %v2044_v4 = vld [vmem:[#allocation2 + $0x18a] sm:$0xff] }
 0x25f   : > { %v1923_v48 = vpop.f32.mrf.mxu3  ;;  %v2061_v46 = vpack.c.bf16 %v2044_v4, %v2043_v41  ;;  %v1602_v41 = vld [vmem:[#allocation2 + $0x1a0] sm:$0xff] }
 0x260   : > { %v1991_v9 = vadd.f32 %v1923_v48, %v1769_v43  ;;  %v1600_v43 = vld [vmem:[#allocation2 + $0x188] sm:$0xff] }
 0x261   : > { %v2150_v23 = vpop.f32.mrf.mxu0 }
 0x262   : > { %v2213_v25 = vadd.f32 %v2145_v30, %v1991_v9 }
 0x263   : > { %v1485_v24 = vpop.f32.mrf.mxu1 }
 0x264   : > { %v2308_v28 = vadd.f32 %v2307_v15, %v2213_v25  ;;  %v2346_v57 = vmul.f32 %v2213_v25, %v2213_v25  ;;  %2697 = vmatmul.msk.bf16.gmra.mxu0 %vm213_vm1, %v3572_v22 }
 0x265   : > { %v1703_v62 = vpop.f32.mrf.mxu2 }
 0x266   : > { %v2377_v55 = vadd.f32 %v2376_v20, %v2346_v57  ;;  %v1770_v32 = vadd.f32 %v1703_v62, %v1547_v42  ;;  %v1599_v20 = vld [vmem:[#allocation2 + $0x180] sm:$0xff]  ;;  %v1822_v57 = vld [vmem:[#allocation2 + $0x189] sm:$0xff] }
 0x267   : > { %v1925_v17 = vpop.f32.mrf.mxu3  ;;  %v1617_v62 = vpack.c.bf16 %v1600_v43, %v1599_v20 }
 0x268   : > { %v1992_v30 = vadd.f32 %v1925_v17, %v1770_v32 }
 0x269   : > { %v2152_v54 = vpop.f32.mrf.mxu0 }
 0x26a   : > { %v2214_v19 = vadd.f32 %v2147_v34, %v1992_v30  ;;  %2663 = vmatmul.msk.bf16.gmra.mxu2 %vm213_vm1, %v1616_v27 }
 0x26b   : > { %v1488_v7 = vpop.f32.mrf.mxu1 }
 0x26c   : > { %v2732_v21 = vpack.c.bf16 %v2214_v19, %v2213_v25  ;;  %v2309_v22 = vadd.f32 %v2308_v28, %v2214_v19  ;;  %v2347_v5 = vmul.f32 %v2214_v19, %v2214_v19  ;;  %2680 = vmatmul.msk.bf16.gmra.mxu3 %vm213_vm1, %v1838_v58  ;;  %v3890_v25 = vld [vmem:[#allocation27_spill] sm:$0xff]  ;;  %v1550_v37 = vadd.f32 %v1488_v7, %v3568_v35  ;;  %v2045_v58 = vld [vmem:[#allocation2 + $0x19a] sm:$0xff] }
 0x26d   : > { %v1706_v18 = vpop.f32.mrf.mxu2  ;;  %v1549_v12 = vadd.f32 %v1485_v24, %v3890_v25  ;;  %v1821_v28 = vld [vmem:[#allocation2 + $0x181] sm:$0xff] }
 0x26e   : > { %2792 = vst [vmem:[%s3712_s4 + $0x20] sm:$0xff] %v2732_v21   ;;  %v2378_v36 = vadd.f32 %v2377_v55, %v2347_v5  ;;  %v1771_v15 = vadd.f32 %v1706_v18, %v1548_v44  ;;  %2647 = vmatmul.msk.bf16.gmra.mxu1 %vm213_vm1, %v1394_v10  ;;  %v1839_v55 = vpack.c.bf16 %v1822_v57, %v1821_v28  ;;  %v2046_v19 = vld [vmem:[#allocation2 + $0x1a2] sm:$0xff]  ;;  %v1601_v18 = vld [vmem:[#allocation2 + $0x198] sm:$0xff] }
 0x26f   : > { %v1928_v34 = vpop.f32.mrf.mxu3  ;;  %v2062_v5 = vpack.c.bf16 %v2046_v19, %v2045_v58  ;;  %v1618_v20 = vpack.c.bf16 %v1602_v41, %v1601_v18 }
 0x270   : > { %v1993_v1 = vadd.f32 %v1928_v34, %v1771_v15  ;;  %v1823_v34 = vld [vmem:[#allocation2 + $0x199] sm:$0xff] }
 0x271   : > { %v2155_v16 = vpop.f32.mrf.mxu0 }
 0x272   : > { %v2215_v29 = vadd.f32 %v2150_v23, %v1993_v1  ;;  %v1824_v1 = vld [vmem:[#allocation2 + $0x1a1] sm:$0xff] }
 0x273   : > { %v1490_v48 = vpop.f32.mrf.mxu1 }
 0x274   : > { %v2310_v9 = vadd.f32 %v2309_v22, %v2215_v29  ;;  %v2348_v52 = vmul.f32 %v2215_v29, %v2215_v29  ;;  %2698 = vmatmul.msk.bf16.gmra.mxu0 %vm213_vm1, %v2061_v46  ;;  %v1551_v7 = vadd.f32 %v1490_v48, %v3576_v38 }
 0x275   : > { %v1708_v60 = vpop.f32.mrf.mxu2 }
 0x276   : > { %v2379_v3 = vadd.f32 %v2378_v36, %v2348_v52  ;;  %v1772_v42 = vadd.f32 %v1708_v60, %v1549_v12  ;;  %v1840_v52 = vpack.c.bf16 %v1824_v1, %v1823_v34 }
 0x277   : > { %v1930_v39 = vpop.f32.mrf.mxu3 }
 0x278   : > { %v1994_v33 = vadd.f32 %v1930_v39, %v1772_v42 }
 0x279   : > { %v2157_v23 = vpop.f32.mrf.mxu0 }
 0x27a   : > { %v2216_v32 = vadd.f32 %v2152_v54, %v1994_v33  ;;  %2664 = vmatmul.msk.bf16.gmra.mxu2 %vm213_vm1, %v1617_v62 }
 0x27b   : > { %v1493_v27 = vpop.f32.mrf.mxu1 }
 0x27c   : > { %v2737_v17 = vpack.c.bf16 %v2216_v32, %v2215_v29  ;;  %v2311_v59 = vadd.f32 %v2310_v9, %v2216_v32  ;;  %v2349_v24 = vmul.f32 %v2216_v32, %v2216_v32  ;;  %2681 = vmatmul.msk.bf16.gmra.mxu3 %vm213_vm1, %v1839_v55  ;;  %v1552_v48 = vadd.f32 %v1493_v27, %v3582_v8 }
 0x27d   : > { %v1711_v30 = vpop.f32.mrf.mxu2 }
 0x27e   : > { %2793 = vst [vmem:[%s3712_s4 + $0x28] sm:$0xff] %v2737_v17   ;;  %v2380_v10 = vadd.f32 %v2379_v3, %v2349_v24  ;;  %v1773_v21 = vadd.f32 %v1711_v30, %v1550_v37  ;;  %2648 = vmatmul.msk.bf16.gmra.mxu1 %vm213_vm1, %v2061_v46 }
 0x27f   : > { %v1933_v22 = vpop.f32.mrf.mxu3 }
 0x280   : > { %v1995_v54 = vadd.f32 %v1933_v22, %v1773_v21 }
 0x281   : > { %v2160_v0 = vpop.f32.mrf.mxu0 }
 0x282   : > { %v2217_v44 = vadd.f32 %v2155_v16, %v1995_v54 }
 0x283   : > { %v1495_v4 = vpop.f32.mrf.mxu1 }
 0x284   : > { %v2312_v36 = vadd.f32 %v2311_v59, %v2217_v44  ;;  %v2350_v35 = vmul.f32 %v2217_v44, %v2217_v44  ;;  %2699 = vmatmul.msk.bf16.gmra.mxu0 %vm213_vm1, %v2062_v5  ;;  %v1553_v59 = vadd.f32 %v1495_v4, %v3589_v50 }
 0x285   : > { %v1713_v15 = vpop.f32.mrf.mxu2 }
 0x286   : > { %v2381_v29 = vadd.f32 %v2380_v10, %v2350_v35  ;;  %v1774_v46 = vadd.f32 %v1713_v15, %v1551_v7 }
 0x287   : > { %v1935_v43 = vpop.f32.mrf.mxu3 }
 0x288   : > { %v1996_v9 = vadd.f32 %v1935_v43, %v1774_v46 }
 0x289   : > { %v2162_v16 = vpop.f32.mrf.mxu0 }
 0x28a   : > { %v2218_v25 = vadd.f32 %v2157_v23, %v1996_v9  ;;  %2665 = vmatmul.msk.bf16.gmra.mxu2 %vm213_vm1, %v1618_v20 }
 0x28b   : > { %v1498_v12 = vpop.f32.mrf.mxu1 }
 0x28c   : > { %v2742_v60 = vpack.c.bf16 %v2218_v25, %v2217_v44  ;;  %v2313_v28 = vadd.f32 %v2312_v36, %v2218_v25  ;;  %v2351_v38 = vmul.f32 %v2218_v25, %v2218_v25  ;;  %2682 = vmatmul.msk.bf16.gmra.mxu3 %vm213_vm1, %v1840_v52  ;;  %v1554_v5 = vadd.f32 %v1498_v12, %v3596_v40 }
 0x28d   : > { %v1716_v57 = vpop.f32.mrf.mxu2 }
 0x28e   : > { %2794 = vst [vmem:[%s3712_s4 + $0x30] sm:$0xff] %v2742_v60   ;;  %v2382_v3 = vadd.f32 %v2381_v29, %v2351_v38  ;;  %v1775_v42 = vadd.f32 %v1716_v57, %v1552_v48 }
 0x28f   : > { %v1938_v62 = vpop.f32.mrf.mxu3 }
 0x290   : > { %v1997_v39 = vadd.f32 %v1938_v62, %v1775_v42 }
 0x291   : > { %v2165_v33 = vpop.f32.mrf.mxu0 }
 0x292   : > { %v2219_v55 = vadd.f32 %v2160_v0, %v1997_v39 }
 0x293   : > { %v1500_v32 = vpop.f32.mrf.mxu1 }
 0x294   : > { %v2314_v23 = vadd.f32 %v2313_v28, %v2219_v55  ;;  %v2352_v17 = vmul.f32 %v2219_v55, %v2219_v55  ;;  %v1555_v34 = vadd.f32 %v1500_v32, %v3603_v56 }
 0x295   : > { %v1718_v24 = vpop.f32.mrf.mxu2 }
 0x296   : > { %v2383_v37 = vadd.f32 %v2382_v3, %v2352_v17  ;;  %v1776_v30 = vadd.f32 %v1718_v24, %v1553_v59 }
 0x297   : > { %v1940_v8 = vpop.f32.mrf.mxu3 }
 0x298   : > { %v1998_v27 = vadd.f32 %v1940_v8, %v1776_v30 }
 0x299   : > { %v2167_v58 = vpop.f32.mrf.mxu0 }
 0x29a   : > { %v2220_v19 = vadd.f32 %v2162_v16, %v1998_v27 }
 0x29b   : > { %v1503_v10 = vpop.f32.mrf.mxu1 }
 0x29c   : > { %v2747_v21 = vpack.c.bf16 %v2220_v19, %v2219_v55  ;;  %v2315_v22 = vadd.f32 %v2314_v23, %v2220_v19  ;;  %v2353_v54 = vmul.f32 %v2220_v19, %v2220_v19  ;;  %v1556_v60 = vadd.f32 %v1503_v10, %v3610_v49 }
 0x29d   : > { %v1721_v0 = vpop.f32.mrf.mxu2 }
 0x29e   : > { %2795 = vst [vmem:[%s3712_s4 + $0x38] sm:$0xff] %v2747_v21   ;;  %v2384_v44 = vadd.f32 %v2383_v37, %v2353_v54  ;;  %v1777_v18 = vadd.f32 %v1721_v0, %v1554_v5 }
 0x29f   : > { %v1943_v41 = vpop.f32.mrf.mxu3 }
 0x2a0   : > { %v1999_v36 = vadd.f32 %v1943_v41, %v1777_v18 }
 0x2a1   : > { %v2170_v50 = vpop.f32.mrf.mxu0 }
 0x2a2   : > { %v2221_v4 = vadd.f32 %v2165_v33, %v1999_v36 }
 0x2a3   : > { %v1505_v35 = vpop.f32.mrf.mxu1 }
 0x2a4   : > { %v2316_v7 = vadd.f32 %v2315_v22, %v2221_v4  ;;  %v2354_v15 = vmul.f32 %v2221_v4, %v2221_v4  ;;  %v1557_v55 = vadd.f32 %v1505_v35, %v3617_v63 }
 0x2a5   : > { %v1723_v1 = vpop.f32.mrf.mxu2 }
 0x2a6   : > { %v2385_v29 = vadd.f32 %v2384_v44, %v2354_v15  ;;  %v1778_v46 = vadd.f32 %v1723_v1, %v1555_v34 }
 0x2a7   : > { %v1945_v20 = vpop.f32.mrf.mxu3 }
 0x2a8   : > { %v2000_v43 = vadd.f32 %v1945_v20, %v1778_v46 }
 0x2a9   : > { %v2172_v40 = vpop.f32.mrf.mxu0 }
 0x2aa   : > { %v2222_v9 = vadd.f32 %v2167_v58, %v2000_v43 }
 0x2ab   : > { %v1508_v52 = vpop.f32.mrf.mxu1 }
 0x2ac   : > { %v2752_v16 = vpack.c.bf16 %v2222_v9, %v2221_v4  ;;  %v2317_v25 = vadd.f32 %v2316_v7, %v2222_v9  ;;  %v2355_v12 = vmul.f32 %v2222_v9, %v2222_v9  ;;  %v1558_v19 = vadd.f32 %v1508_v52, %v3623_v2 }
 0x2ad   : > { %v1726_v28 = vpop.f32.mrf.mxu2 }
 0x2ae   : > { %2796 = vst [vmem:[%s3712_s4 + $0x40] sm:$0xff] %v2752_v16   ;;  %v2386_v38 = vadd.f32 %v2385_v29, %v2355_v12  ;;  %v1779_v48 = vadd.f32 %v1726_v28, %v1556_v60 }
 0x2af   : > { %v1948_v57 = vpop.f32.mrf.mxu3 }
 0x2b0   : > { %v2001_v3 = vadd.f32 %v1948_v57, %v1779_v48 }
 0x2b1   : > { %v2175_v56 = vpop.f32.mrf.mxu0 }
 0x2b2   : > { %v2223_v42 = vadd.f32 %v2170_v50, %v2001_v3 }
 0x2b3   : > { %v1510_v62 = vpop.f32.mrf.mxu1 }
 0x2b4   : > { %v2318_v39 = vadd.f32 %v2317_v25, %v2223_v42  ;;  %v2356_v33 = vmul.f32 %v2223_v42, %v2223_v42  ;;  %v1559_v36 = vadd.f32 %v1510_v62, %v3630_v11 }
 0x2b5   : > { %v1728_v32 = vpop.f32.mrf.mxu2 }
 0x2b6   : > { %v2387_v23 = vadd.f32 %v2386_v38, %v2356_v33  ;;  %v1780_v17 = vadd.f32 %v1728_v32, %v1557_v55 }
 0x2b7   : > { %v1950_v59 = vpop.f32.mrf.mxu3 }
 0x2b8   : > { %v2002_v24 = vadd.f32 %v1950_v59, %v1780_v17 }
 0x2b9   : > { %v2177_v49 = vpop.f32.mrf.mxu0 }
 0x2ba   : > { %v2224_v37 = vadd.f32 %v2172_v40, %v2002_v24 }
 0x2bb   : > { %v1513_v30 = vpop.f32.mrf.mxu1 }
 0x2bc   : > { %v2757_v8 = vpack.c.bf16 %v2224_v37, %v2223_v42  ;;  %v2319_v27 = vadd.f32 %v2318_v39, %v2224_v37  ;;  %v2357_v58 = vmul.f32 %v2224_v37, %v2224_v37  ;;  %v1560_v43 = vadd.f32 %v1513_v30, %v3636_v31 }
 0x2bd   : > { %v1731_v10 = vpop.f32.mrf.mxu2 }
 0x2be   : > { %2797 = vst [vmem:[%s3712_s4 + $0x48] sm:$0xff] %v2757_v8   ;;  %v2388_v21 = vadd.f32 %v2387_v23, %v2357_v58  ;;  %v1781_v22 = vadd.f32 %v1731_v10, %v1558_v19 }
 0x2bf   : > { %v1953_v54 = vpop.f32.mrf.mxu3 }
 0x2c0   : > { %v2003_v5 = vadd.f32 %v1953_v54, %v1781_v22 }
 0x2c1   : > { %v2180_v63 = vpop.f32.mrf.mxu0 }
 0x2c2   : > { %v2225_v0 = vadd.f32 %v2175_v56, %v2003_v5 }
 0x2c3   : > { %v1515_v44 = vpop.f32.mrf.mxu1 }
 0x2c4   : > { %v2320_v18 = vadd.f32 %v2319_v27, %v2225_v0  ;;  %v2358_v41 = vmul.f32 %v2225_v0, %v2225_v0  ;;  %v1561_v38 = vadd.f32 %v1515_v44, %v3643_v26 }
 0x2c5   : > { %v1733_v50 = vpop.f32.mrf.mxu2 }
 0x2c6   : > { %v2389_v4 = vadd.f32 %v2388_v21, %v2358_v41  ;;  %v1782_v35 = vadd.f32 %v1733_v50, %v1559_v36 }
 0x2c7   : > { %v1955_v7 = vpop.f32.mrf.mxu3 }
 0x2c8   : > { %v2004_v15 = vadd.f32 %v1955_v7, %v1782_v35 }
 0x2c9   : > { %v2182_v2 = vpop.f32.mrf.mxu0 }
 0x2ca   : > { %v2226_v34 = vadd.f32 %v2177_v49, %v2004_v15 }
 0x2cb   : > { %v1518_v1 = vpop.f32.mrf.mxu1 }
 0x2cc   : > { %v2762_v29 = vpack.c.bf16 %v2226_v34, %v2225_v0  ;;  %v2321_v46 = vadd.f32 %v2320_v18, %v2226_v34  ;;  %v2359_v20 = vmul.f32 %v2226_v34, %v2226_v34  ;;  %v1562_v32 = vadd.f32 %v1518_v1, %v3649_v6 }
 0x2cd   : > { %v1736_v40 = vpop.f32.mrf.mxu2 }
 0x2ce   : > { %2798 = vst [vmem:[%s3712_s4 + $0x50] sm:$0xff] %v2762_v29   ;;  %v2390_v9 = vadd.f32 %v2389_v4, %v2359_v20  ;;  %v1783_v52 = vadd.f32 %v1736_v40, %v1560_v43 }
 0x2cf   : > { %v1958_v16 = vpop.f32.mrf.mxu3 }
 0x2d0   : > { %v2005_v25 = vadd.f32 %v1958_v16, %v1783_v52 }
 0x2d1   : > { %v2185_v12 = vpop.f32.mrf.mxu0 }
 0x2d2   : > { %v2227_v11 = vadd.f32 %v2180_v63, %v2005_v25 }
 0x2d3   : > { %v1520_v57 = vpop.f32.mrf.mxu1 }
 0x2d4   : > { %v2322_v60 = vadd.f32 %v2321_v46, %v2227_v11  ;;  %v2360_v28 = vmul.f32 %v2227_v11, %v2227_v11  ;;  %v1563_v58 = vadd.f32 %v1520_v57, %v3656_v45 }
 0x2d5   : > { %v1738_v48 = vpop.f32.mrf.mxu2 }
 0x2d6   : > { %v2391_v3 = vadd.f32 %v2390_v9, %v2360_v28  ;;  %v1784_v56 = vadd.f32 %v1738_v48, %v1561_v38 }
 0x2d7   : > { %v1960_v42 = vpop.f32.mrf.mxu3 }
 0x2d8   : > { %v2006_v62 = vadd.f32 %v1960_v42, %v1784_v56 }
 0x2d9   : > { %v2187_v17 = vpop.f32.mrf.mxu0 }
 0x2da   : > { %v2228_v31 = vadd.f32 %v2182_v2, %v2006_v62 }
 0x2db   : > { %v1523_v37 = vpop.f32.mrf.mxu1 }
 0x2dc   : > { %v2767_v39 = vpack.c.bf16 %v2228_v31, %v2227_v11  ;;  %v2323_v33 = vadd.f32 %v2322_v60, %v2228_v31  ;;  %v2361_v55 = vmul.f32 %v2228_v31, %v2228_v31  ;;  %v1564_v41 = vadd.f32 %v1523_v37, %v3662_v14 }
 0x2dd   : > { %v1741_v23 = vpop.f32.mrf.mxu2 }
 0x2de   : > { %2799 = vst [vmem:[%s3712_s4 + $0x58] sm:$0xff] %v2767_v39   ;;  %v2392_v59 = vadd.f32 %v2391_v3, %v2361_v55  ;;  %v1785_v24 = vadd.f32 %v1741_v23, %v1562_v32 }
 0x2df   : > { %v1963_v49 = vpop.f32.mrf.mxu3 }
 0x2e0   : > { %v2007_v26 = vadd.f32 %v1963_v49, %v1785_v24 }
 0x2e1   : > { %v2190_v54 = vpop.f32.mrf.mxu0 }
 0x2e2   : > { %v2229_v30 = vadd.f32 %v2185_v12, %v2007_v26 }
 0x2e3   : > { %v1525_v5 = vpop.f32.mrf.mxu1 }
 0x2e4   : > { %v2324_v8 = vadd.f32 %v2323_v33, %v2229_v30  ;;  %v2362_v27 = vmul.f32 %v2229_v30, %v2229_v30  ;;  %v1565_v29 = vadd.f32 %v1525_v5, %v3669_v51 }
 0x2e5   : > { %v1743_v19 = vpop.f32.mrf.mxu2 }
 0x2e6   : > { %v2393_v10 = vadd.f32 %v2392_v59, %v2362_v27  ;;  %v1786_v21 = vadd.f32 %v1743_v19, %v1563_v58 }
 0x2e7   : > { %v1965_v22 = vpop.f32.mrf.mxu3 }
 0x2e8   : > { %v2008_v6 = vadd.f32 %v1965_v22, %v1786_v21 }
 0x2e9   : > { %v2192_v45 = vpop.f32.mrf.mxu0 }
 0x2ea   : > { %v2230_v63 = vadd.f32 %v2187_v17, %v2008_v6 }
 0x2eb   : > { %v1528_v2 = vpop.f32.mrf.mxu1 }
 0x2ec   : > { %v2772_v0 = vpack.c.bf16 %v2230_v63, %v2229_v30  ;;  %v2325_v44 = vadd.f32 %v2324_v8, %v2230_v63  ;;  %v2363_v18 = vmul.f32 %v2230_v63, %v2230_v63  ;;  %v1566_v12 = vadd.f32 %v1528_v2, %v3675_v61 }
 0x2ed   : > { %v1746_v36 = vpop.f32.mrf.mxu2 }
 0x2ee   : > { %2800 = vst [vmem:[%s3712_s4 + $0x60] sm:$0xff] %v2772_v0   ;;  %v2394_v50 = vadd.f32 %v2393_v10, %v2363_v18  ;;  %v1787_v4 = vadd.f32 %v1746_v36, %v1564_v41 }
 0x2ef   : > { %v1968_v35 = vpop.f32.mrf.mxu3 }
 0x2f0   : > { %v2009_v7 = vadd.f32 %v1968_v35, %v1787_v4 }
 0x2f1   : > { %v2195_v52 = vpop.f32.mrf.mxu0 }
 0x2f2   : > { %v2231_v15 = vadd.f32 %v2190_v54, %v2009_v7 }
 0x2f3   : > { %v1530_v28 = vpop.f32.mrf.mxu1 }
 0x2f4   : > { %v2326_v34 = vadd.f32 %v2325_v44, %v2231_v15  ;;  %v2364_v1 = vmul.f32 %v2231_v15, %v2231_v15  ;;  %v1567_v62 = vadd.f32 %v1530_v28, %v3682_v47 }
 0x2f5   : > { %v1748_v46 = vpop.f32.mrf.mxu2 }
 0x2f6   : > { %v2395_v20 = vadd.f32 %v2394_v50, %v2364_v1  ;;  %v1788_v43 = vadd.f32 %v1748_v46, %v1565_v29 }
 0x2f7   : > { %v1970_v40 = vpop.f32.mrf.mxu3 }
 0x2f8   : > { %v2010_v9 = vadd.f32 %v1970_v40, %v1788_v43 }
 0x2f9   : > { %v2197_v31 = vpop.f32.mrf.mxu0 }
 0x2fa   : > { %v2232_v14 = vadd.f32 %v2192_v45, %v2010_v9 }
 0x2fb   : > { %v1533_v23 = vpop.f32.mrf.mxu1 }
 0x2fc   : > { %v2777_v16 = vpack.c.bf16 %v2232_v14, %v2231_v15  ;;  %v2327_v25 = vadd.f32 %v2326_v34, %v2232_v14  ;;  %v2365_v11 = vmul.f32 %v2232_v14, %v2232_v14  ;;  %v1568_v37 = vadd.f32 %v1533_v23, %v3688_v53 }
 0x2fd   : > { %v1751_v60 = vpop.f32.mrf.mxu2 }
 0x2fe   : > { %2801 = vst [vmem:[%s3712_s4 + $0x68] sm:$0xff] %v2777_v16   ;;  %v2396_v38 = vadd.f32 %v2395_v20, %v2365_v11  ;;  %v1789_v48 = vadd.f32 %v1751_v60, %v1566_v12 }
 0x2ff   : > { %v1973_v57 = vpop.f32.mrf.mxu3 }
 0x300   : > { %v2011_v3 = vadd.f32 %v1973_v57, %v1789_v48 }
 0x301   : > { %v2200_v47 = vpop.f32.mrf.mxu0 }
 0x302   : > { %v2233_v51 = vadd.f32 %v2195_v52, %v2011_v3 }
 0x303   : > { %v1535_v19 = vpop.f32.mrf.mxu1 }
 0x304   : > { %v2328_v56 = vadd.f32 %v2327_v25, %v2233_v51  ;;  %v2366_v42 = vmul.f32 %v2233_v51, %v2233_v51  ;;  %v1569_v54 = vadd.f32 %v1535_v19, %v3695_v13 }
 0x305   : > { %v1753_v39 = vpop.f32.mrf.mxu2 }
 0x306   : > { %v2397_v33 = vadd.f32 %v2396_v38, %v2366_v42  ;;  %v1790_v55 = vadd.f32 %v1753_v39, %v1567_v62 }
 0x307   : > { %v1975_v32 = vpop.f32.mrf.mxu3 }
 0x308   : > { %v2012_v61 = vadd.f32 %v1975_v32, %v1790_v55 }
 0x309   : > { %v2202_v44 = vpop.f32.mrf.mxu0 }
 0x30a   : > { %v2234_v17 = vadd.f32 %v2197_v31, %v2012_v61 }
 0x30c   : > { %v2782_v59 = vpack.c.bf16 %v2234_v17, %v2233_v51  ;;  %v2329_v24 = vadd.f32 %v2328_v56, %v2234_v17  ;;  %v2367_v49 = vmul.f32 %v2234_v17, %v2234_v17 }
 0x30d   : > { %v1756_v26 = vpop.f32.mrf.mxu2 }
 0x30e   : > { %2802 = vst [vmem:[%s3712_s4 + $0x70] sm:$0xff] %v2782_v59   ;;  %v2398_v30 = vadd.f32 %v2397_v33, %v2367_v49  ;;  %v1791_v8 = vadd.f32 %v1756_v26, %v1568_v37 }
 0x30f   : > { %v1978_v27 = vpop.f32.mrf.mxu3 }
 0x310   : > { %v2013_v58 = vadd.f32 %v1978_v27, %v1791_v8 }
 0x312   : > { %v2235_v10 = vadd.f32 %v2200_v47, %v2013_v58 }
 0x314   : > { %v2330_v21 = vadd.f32 %v2329_v24, %v2235_v10  ;;  %v2368_v22 = vmul.f32 %v2235_v10, %v2235_v10 }
 0x315   : > { %v1758_v6 = vpop.f32.mrf.mxu2 }
 0x316   : > { %v2399_v5 = vadd.f32 %v2398_v30, %v2368_v22  ;;  %v1792_v63 = vadd.f32 %v1758_v6, %v1569_v54 }
 0x317   : > { %v1980_v53 = vpop.f32.mrf.mxu3 }
 0x318   : > { %v2014_v0 = vadd.f32 %v1980_v53, %v1792_v63 }
 0x31a   : > { %v2236_v18 = vadd.f32 %v2202_v44, %v2014_v0 }
 0x31c   : > { %v2787_v41 = vpack.c.bf16 %v2236_v18, %v2235_v10  ;;  %v2331_v36 = vadd.f32 %v2330_v21, %v2236_v18  ;;  %v2369_v13 = vmul.f32 %v2236_v18, %v2236_v18 }
 0x31e   : > { %2803 = vst [vmem:[%s3712_s4 + $0x78] sm:$0xff] %v2787_v41   ;;  %v2332_v50 = vrot.slane %v2331_v36, 4  ;;  %v2400_v4 = vadd.f32 %v2399_v5, %v2369_v13 }
 0x31f   : > { %2881 = shalt.err (!%p2878_p3)
}
 0x320   : > { %s2951_s28 = smov 64   ;;  %s2952_s30 = smov 4   ;;  %v2333_v35 = vadd.f32 %v2332_v50, %v2331_v36  ;;  %v2401_v7 = vrot.slane %v2400_v4, 4  ;;  %vm2407_vm3 = vcmask 1040384  }
 0x321   : > { %2807 = dma.vmem_to_hbm [thread:$0]  (%p3011_p5), %s2429_s9, 2048, %s2431_s10, %s2411_s11, %s2951_s28, %s2951_s28, %s2952_s30  }
 0x322   : > { %v2334_v45 = vrot.slane %v2333_v35, 2  ;;  %v2402_v15 = vadd.f32 %v2401_v7, %v2400_v4  ;;  %s2545_s4 = sshll.u32 %s3705_s29, 1  ;;  %s2704_s5 = sshll.u32 %s2994_s16, 1 }
 0x323   : > { %s2443_s8 = scalar_lea.hbm %s3845_s3, %s2704_s5  ;;  %s174_s17 = scalar_lea.vmem [#allocation5], %s2545_s4 }
 0x324   : > { %v2335_v2 = vadd.f32 %v2334_v45, %v2333_v35  ;;  %v2403_v34 = vrot.slane %v2402_v15, 2  ;;  %s2445_s19 = sshll.u32 %s174_s17, 4  ;;  %s2447_s9 = sshll.u32 %s2443_s8, 4  ;;  %s2446_s19 = int_to_ptr.vmem [resolvable:$true] %s2445_s19  ;;  %s2448_s9 = int_to_ptr.hbm [resolvable:$true] %s2447_s9 }
 0x325   : > { %s2416_s16 = scalar_lea.sflag [#allocation6], %s3705_s29  ;;  %s2896_s10 = sshra.s32 %s2448_s9, 4  ;;  %s2897_s10 = int_to_ptr.hbm [resolvable:$true] %s2896_s10 }
 0x326   : > { %v2336_v1 = vrot.slane %v2335_v2, 1  ;;  %v2404_v29 = vadd.f32 %v2403_v34, %v2402_v15  ;;  %s2898_s11 = scalar_lea.hbm %s2897_s10, 2  ;;  %s2902_s25 = scalar_lea.hbm %s3845_s3, 4 }
 0x327   : > { %p2899_p4 = scmp.ne.s32.totalorder %s2897_s10, %s2898_s11  ;;  %p2903_p9 = scmp.lt.s32.totalorder %s2897_s10, %s3845_s3 }
 0x328   : > { %v2405_v46 = vrot.slane %v2404_v29, 1  ;;  %v2337_v20 = vadd.f32 %v2336_v1, %v2335_v2  ;;  %p2904_p10 = scmp.lt.s32.totalorder %s2902_s25, %s2898_s11 }
 0x329   : > { %p2900_p7 = pnand %p2899_p4, %p3011_p5 }
 0x32a   : > { %v2406_v43 = vadd.f32 %v2405_v46, %v2404_v29  ;;  %p2905_p11 = por %p2904_p10, %p2903_p9 }
 0x32b   : > { %p2901_p8 = pneg %p2900_p7 }
 0x32c   : > { %v2408_v40 = vsel %vm2407_vm3, %v2337_v20, %v2406_v43 }
 0x32d   : > { %2409 = vst [vmem:[%s174_s17] sm:$0x3] %v2408_v40  ;;  %p2906_p12 = pnand %p2905_p11, %p2901_p8 }
 0x32f   : > { %2909 = shalt.err (!%p2906_p12)
}
 0x330   : > { %2808 = dma.vmem_to_hbm [thread:$0]  (%p3011_p5), %s2446_s19, 32, %s2448_s9, %s2416_s16  }
 0x331 PF: > { %p2818_p13 = scmp.ge.s32.totalorder %s2948_s15, 2  ;;  %s2459_s29 = sand.u32 1, %s2936_s12  }
 0x332   : > { %s2460_s28 = scalar_lea.sflag [#allocation4], %s2459_s29 }
 0x333   : > { %p2812_p0 = pnand %p2818_p13, %p3015_p6 }
 0x335   : > { %p2813_p1 = pneg %p2812_p0 }
 0x337   : > { %2927 = dma.done.wait (%p2813_p1), %s2460_s28, 2048  }
 0x338   : > { %2929 = vsyncadd (%p2813_p1), %s2460_s28, 4294965248  ;;  %s2470_s30 = scalar_lea.sflag [#allocation6], %s2459_s29 }
 0x339   : > { %2931 = dma.done.wait (%p2813_p1), %s2470_s30, 32  }
 0x33a   : > { %2933 = vsyncadd (%p2813_p1), %s2470_s30, 4294967264  ;;  %p17_p5 = scmp.ge.s32.totalorder %s2998_s18, 4   ;;  %s3891_s12 = smov %s2940_s13 }
 0x33b   : > { %s3892_s13 = smov %s2944_s14  ;;  %s3893_s14 = smov %s3009_s21 }
 0x33c   : > { %s3894_s15 = smov %s2998_s18  ;;  %19 = sbr.rel (!%p17_p5) target bundleno = 5 (0x5), region = 90 }
 0x341   :  { %2476 = vsyncpa [#allocation4], 1 }
 0x342   :  { %2478 = vsyncpa [#allocation4 + $0x1], 1 }
 0x343   :  { %2479 = vsyncpa [#allocation6], 1 }
 0x344   :  { %2481 = vsyncpa [#allocation6 + $0x1], 1 }

</bundles_post_ra>
